<compile_context>
chip_gen: v6e
topology: v6e:2x2x1
jax: 0.10.0
libtpu: 0.0.40
codegen_flags: <defaults>
</compile_context>

<pallas_src>
import functools

import jax
import jax.numpy as jnp
from jax.experimental import pallas as pl
from jax.experimental.pallas import tpu as pltpu

LATENT_DIM = 32
IN_DIM = 28 * 28          # 784
HID_DIM = 256
LANE = 128
HEAD_PAD = max(LANE, ((2 * LATENT_DIM + LANE - 1) // LANE) * LANE)   # 128
OUT_PAD = ((IN_DIM + LANE - 1) // LANE) * LANE                       # 896 = 7*128
TILE_B_MAX = 256          # match 2x256x256 MXU M tile on v6e/v7x


def _round_up(x, m):
    return ((x + m - 1) // m) * m


def vae_kernel(x_ref, eps_ref,
               w_enc_ref, b_enc_ref,
               w_heads_ref, b_heads_ref,
               w_d1_ref, b_d1_ref,
               w_d2_ref, b_d2_ref,
               out_ref, heads_ref):
    x = x_ref[...]                                              # (TB, 784) f32

    # ---- encoder: Linear(784, 256) + ReLU ----
    h = jnp.dot(x, w_enc_ref[...], preferred_element_type=jnp.float32) + b_enc_ref[...]
    h = jnp.maximum(h, 0.0)

    # ---- fused mu|logvar heads: single Linear(256, 128-padded) ----
    heads = jnp.dot(h, w_heads_ref[...], preferred_element_type=jnp.float32) + b_heads_ref[...]
    mu = heads[:, :LATENT_DIM]
    logvar = heads[:, LATENT_DIM:2 * LATENT_DIM]

    # ---- reparameterization: z = mu + eps * exp(0.5 * logvar) (exp on EUP) ----
    z = mu + eps_ref[...] * jnp.exp(0.5 * logvar)

    # ---- decoder: Linear(latent, 256) + ReLU -> Linear(256, 896-padded) -> sigmoid ----
    h2 = jnp.dot(z, w_d1_ref[...], preferred_element_type=jnp.float32) + b_d1_ref[...]
    h2 = jnp.maximum(h2, 0.0)
    logits = jnp.dot(h2, w_d2_ref[...], preferred_element_type=jnp.float32) + b_d2_ref[...]

    # Lane-dense stores: (TB, 896) and (TB, 128).
    out_ref[...] = jax.nn.sigmoid(logits)
    heads_ref[...] = heads


@functools.partial(jax.jit, static_argnames=())
def vae_forward(x_nchw, params, eps):
    """x_nchw: (B, 1, 28, 28) f32; eps: (B, LATENT_DIM) f32.

    Returns (recon (B,1,28,28), mu (B,latent), logvar (B,latent)).
    """
    w_enc, b_enc, w_mu, b_mu, w_lv, b_lv, w_d1, b_d1, w_d2, b_d2 = params

    B = x_nchw.shape[0]
    x_flat = x_nchw.reshape(B, IN_DIM)

    # --- wrapper-side layout plumbing (pure zero-padding / concatenation) ---
    # Fused + lane-padded heads weight: (256, 128), cols [0:32)=mu, [32:64)=logvar.
    w_heads = jnp.zeros((HID_DIM, HEAD_PAD), jnp.float32)
    w_heads = w_heads.at[:, :LATENT_DIM].set(w_mu)
    w_heads = w_heads.at[:, LATENT_DIM:2 * LATENT_DIM].set(w_lv)
    b_heads = jnp.zeros((1, HEAD_PAD), jnp.float32)
    b_heads = b_heads.at[:, :LATENT_DIM].set(b_mu)
    b_heads = b_heads.at[:, LATENT_DIM:2 * LATENT_DIM].set(b_lv)

    # Lane-padded decoder output weight: (256, 896).
    w_d2p = jnp.zeros((HID_DIM, OUT_PAD), jnp.float32).at[:, :IN_DIM].set(w_d2)
    b_d2p = jnp.zeros((1, OUT_PAD), jnp.float32).at[:, :IN_DIM].set(b_d2)

    # --- batch tiling: tile of up to 256 rows, padded to a multiple of 8 ---
    tile_b = min(TILE_B_MAX, _round_up(B, 8))
    b_pad = _round_up(B, tile_b)
    if b_pad != B:
        x_flat = jnp.pad(x_flat, ((0, b_pad - B), (0, 0)))
        eps = jnp.pad(eps, ((0, b_pad - B), (0, 0)))
    grid = (b_pad // tile_b,)

    # Activation tiles follow the batch grid; weights/biases are resident.
    def batch_map(i):
        return (i, 0)

    def const_map(i):
        return (0, 0)

    in_specs = [
        pl.BlockSpec((tile_b, IN_DIM), batch_map),          # x
        pl.BlockSpec((tile_b, LATENT_DIM), batch_map),      # eps
        pl.BlockSpec((IN_DIM, HID_DIM), const_map),         # w_enc
        pl.BlockSpec((1, HID_DIM), const_map),              # b_enc
        pl.BlockSpec((HID_DIM, HEAD_PAD), const_map),       # w_heads
        pl.BlockSpec((1, HEAD_PAD), const_map),             # b_heads
        pl.BlockSpec((LATENT_DIM, HID_DIM), const_map),     # w_d1
        pl.BlockSpec((1, HID_DIM), const_map),              # b_d1
        pl.BlockSpec((HID_DIM, OUT_PAD), const_map),        # w_d2 (padded)
        pl.BlockSpec((1, OUT_PAD), const_map),              # b_d2 (padded)
    ]
    out_specs = (
        pl.BlockSpec((tile_b, OUT_PAD), batch_map),         # recon (padded cols)
        pl.BlockSpec((tile_b, HEAD_PAD), batch_map),        # fused mu|logvar slab
    )

    flops = 2 * b_pad * (IN_DIM * HID_DIM
                         + HID_DIM * HEAD_PAD
                         + LATENT_DIM * HID_DIM
                         + HID_DIM * OUT_PAD)
    transcendentals = b_pad * (LATENT_DIM + OUT_PAD)
    weight_bytes = 4 * (IN_DIM * HID_DIM + HID_DIM + HID_DIM * HEAD_PAD + HEAD_PAD
                        + LATENT_DIM * HID_DIM + HID_DIM + HID_DIM * OUT_PAD + OUT_PAD)
    bytes_accessed = 4 * b_pad * (IN_DIM + LATENT_DIM + OUT_PAD + HEAD_PAD) + weight_bytes

    out_pad, heads_out = pl.pallas_call(
        vae_kernel,
        grid=grid,
        out_shape=(
            jax.ShapeDtypeStruct((b_pad, OUT_PAD), jnp.float32),
            jax.ShapeDtypeStruct((b_pad, HEAD_PAD), jnp.float32),
        ),
        in_specs=in_specs,
        out_specs=out_specs,
        compiler_params=pltpu.CompilerParams(
            dimension_semantics=("parallel",),
        ),
        cost_estimate=pl.CostEstimate(
            flops=flops,
            transcendentals=transcendentals,
            bytes_accessed=bytes_accessed,
        ),
    )(x_flat, eps, w_enc, b_enc, w_heads, b_heads, w_d1, b_d1, w_d2p, b_d2p)

    recon = out_pad[:B, :IN_DIM].reshape(B, 1, 28, 28)
    mu = heads_out[:B, :LATENT_DIM]
    logvar = heads_out[:B, LATENT_DIM:2 * LATENT_DIM]
    return recon, mu, logvar


def init_params(key, latent_dim=LATENT_DIM):
    """Deterministic init; Linear weights stored as (in, out), biases as (1, out)."""
    def linear(k, fan_in, fan_out):
        kw, kb = jax.random.split(k)
        bound = 1.0 / jnp.sqrt(fan_in)
        w = jax.random.uniform(kw, (fan_in, fan_out), jnp.float32, -bound, bound)
        b = jax.random.uniform(kb, (1, fan_out), jnp.float32, -bound, bound)
        return w, b

    k1, k2, k3, k4, k5 = jax.random.split(key, 5)
    w_enc, b_enc = linear(k1, IN_DIM, HID_DIM)
    w_mu, b_mu = linear(k2, HID_DIM, latent_dim)
    w_lv, b_lv = linear(k3, HID_DIM, latent_dim)
    w_d1, b_d1 = linear(k4, latent_dim, HID_DIM)
    w_d2, b_d2 = linear(k5, HID_DIM, IN_DIM)
    return (w_enc, b_enc, w_mu, b_mu, w_lv, b_lv, w_d1, b_d1, w_d2, b_d2)


def reference_forward(x_nchw, params, eps):
    """Pure-JAX reference with identical semantics (for correctness check)."""
    w_enc, b_enc, w_mu, b_mu, w_lv, b_lv, w_d1, b_d1, w_d2, b_d2 = params
    B = x_nchw.shape[0]
    x = x_nchw.reshape(B, IN_DIM)
    h = jnp.maximum(x @ w_enc + b_enc, 0.0)
    mu = h @ w_mu + b_mu
    logvar = h @ w_lv + b_lv
    z = mu + eps * jnp.exp(0.5 * logvar)
    h2 = jnp.maximum(z @ w_d1 + b_d1, 0.0)
    out = jax.nn.sigmoid(h2 @ w_d2 + b_d2)
    return out.reshape(B, 1, 28, 28), mu, logvar


if __name__ == "__main__":
    key = jax.random.PRNGKey(0)
    k_params, k_x, k_eps = jax.random.split(key, 3)

    B = 8
    params = init_params(k_params)
    # Input in [0, 1] like MNIST pixels, NCHW.
    x = jax.random.uniform(k_x, (B, 1, 28, 28), jnp.float32)
    # Reparameterization noise (torch.randn_like equivalent).
    eps = jax.random.normal(k_eps, (B, LATENT_DIM), jnp.float32)

    recon, mu, logvar = jax.block_until_ready(vae_forward(x, params, eps))

    # Correctness check against pure-JAX reference.
    recon_ref, mu_ref, lv_ref = reference_forward(x, params, eps)
    assert recon.shape == (B, 1, 28, 28)
    assert jnp.allclose(recon, recon_ref, atol=1e-5, rtol=1e-5)
    assert jnp.allclose(mu, mu_ref, atol=1e-5, rtol=1e-5)
    assert jnp.allclose(logvar, lv_ref, atol=1e-5, rtol=1e-5)

    print("KERNEL_OK")
</pallas_src>

<mosaic_0001>
module attributes {stable_mosaic.version = 11 : i64} {
  func.func @vae_kernel(%arg0: i32, %arg1: memref<8x784xf32, #tpu.memory_space<vmem>>, %arg2: memref<8x32xf32, #tpu.memory_space<vmem>>, %arg3: memref<784x256xf32, #tpu.memory_space<vmem>>, %arg4: memref<1x256xf32, #tpu.memory_space<vmem>>, %arg5: memref<256x128xf32, #tpu.memory_space<vmem>>, %arg6: memref<1x128xf32, #tpu.memory_space<vmem>>, %arg7: memref<32x256xf32, #tpu.memory_space<vmem>>, %arg8: memref<1x256xf32, #tpu.memory_space<vmem>>, %arg9: memref<256x896xf32, #tpu.memory_space<vmem>>, %arg10: memref<1x896xf32, #tpu.memory_space<vmem>>, %arg11: memref<8x896xf32, #tpu.memory_space<vmem>>, %arg12: memref<8x128xf32, #tpu.memory_space<vmem>>) attributes {dimension_semantics = [#tpu.dimension_semantics<parallel>], iteration_bounds = array<i64: 1>, scalar_prefetch = 0 : i64, scratch_operands = 0 : i64, tpu.core_type = #tpu.core_type<tc>, window_params = [{transform_indices = @transform_0, window_bounds = array<i64: 8, 784>}, {transform_indices = @transform_1, window_bounds = array<i64: 8, 32>}, {pipeline_mode = #tpu.pipeline_mode<synchronous>, transform_indices = @transform_2, window_bounds = array<i64: 784, 256>}, {pipeline_mode = #tpu.pipeline_mode<synchronous>, transform_indices = @transform_3, window_bounds = array<i64: 1, 256>}, {pipeline_mode = #tpu.pipeline_mode<synchronous>, transform_indices = @transform_4, window_bounds = array<i64: 256, 128>}, {pipeline_mode = #tpu.pipeline_mode<synchronous>, transform_indices = @transform_5, window_bounds = array<i64: 1, 128>}, {pipeline_mode = #tpu.pipeline_mode<synchronous>, transform_indices = @transform_6, window_bounds = array<i64: 32, 256>}, {pipeline_mode = #tpu.pipeline_mode<synchronous>, transform_indices = @transform_7, window_bounds = array<i64: 1, 256>}, {pipeline_mode = #tpu.pipeline_mode<synchronous>, transform_indices = @transform_8, window_bounds = array<i64: 256, 896>}, {pipeline_mode = #tpu.pipeline_mode<synchronous>, transform_indices = @transform_9, window_bounds = array<i64: 1, 896>}, {transform_indices = @transform_10, window_bounds = array<i64: 8, 896>}, {transform_indices = @transform_11, window_bounds = array<i64: 8, 128>}]} {
    %c0 = arith.constant 0 : index
    %c0_0 = arith.constant 0 : index
    %0 = vector.load %arg1[%c0, %c0_0] : memref<8x784xf32, #tpu.memory_space<vmem>>, vector<8x784xf32>
    %c0_1 = arith.constant 0 : index
    %c0_2 = arith.constant 0 : index
    %1 = vector.load %arg3[%c0_1, %c0_2] : memref<784x256xf32, #tpu.memory_space<vmem>>, vector<784x256xf32>
    %cst = arith.constant dense<0.000000e+00> : vector<8x256xf32>
    %2 = tpu.matmul %0, %1, %cst {dimension_numbers = #tpu.dot_dimension_numbers<[1], [0], [0], [1], [0, 0, 1, 1], [], []>} : vector<8x784xf32>, vector<784x256xf32>, vector<8x256xf32> -> vector<8x256xf32>
    %c0_3 = arith.constant 0 : index
    %c0_4 = arith.constant 0 : index
    %3 = vector.load %arg4[%c0_3, %c0_4] : memref<1x256xf32, #tpu.memory_space<vmem>>, vector<1x256xf32>
    %4 = vector.broadcast %3 : vector<1x256xf32> to vector<8x256xf32>
    %5 = arith.addf %2, %4 : vector<8x256xf32>
    %cst_5 = arith.constant 0.000000e+00 : f32
    %6 = vector.broadcast %cst_5 : f32 to vector<8x256xf32>
    %7 = arith.maximumf %5, %6 : vector<8x256xf32>
    %c0_6 = arith.constant 0 : index
    %c0_7 = arith.constant 0 : index
    %8 = vector.load %arg5[%c0_6, %c0_7] : memref<256x128xf32, #tpu.memory_space<vmem>>, vector<256x128xf32>
    %cst_8 = arith.constant dense<0.000000e+00> : vector<8x128xf32>
    %9 = tpu.matmul %7, %8, %cst_8 {dimension_numbers = #tpu.dot_dimension_numbers<[1], [0], [0], [1], [0, 0, 1, 1], [], []>} : vector<8x256xf32>, vector<256x128xf32>, vector<8x128xf32> -> vector<8x128xf32>
    %c0_9 = arith.constant 0 : index
    %c0_10 = arith.constant 0 : index
    %10 = vector.load %arg6[%c0_9, %c0_10] : memref<1x128xf32, #tpu.memory_space<vmem>>, vector<1x128xf32>
    %11 = vector.broadcast %10 : vector<1x128xf32> to vector<8x128xf32>
    %12 = arith.addf %9, %11 : vector<8x128xf32>
    %13 = vector.extract_strided_slice %12 {offsets = [0, 0], sizes = [8, 32], strides = [1, 1]} : vector<8x128xf32> to vector<8x32xf32>
    %14 = vector.extract_strided_slice %12 {offsets = [0, 32], sizes = [8, 32], strides = [1, 1]} : vector<8x128xf32> to vector<8x32xf32>
    %c0_11 = arith.constant 0 : index
    %c0_12 = arith.constant 0 : index
    %15 = vector.load %arg2[%c0_11, %c0_12] : memref<8x32xf32, #tpu.memory_space<vmem>>, vector<8x32xf32>
    %cst_13 = arith.constant 5.000000e-01 : f32
    %16 = vector.broadcast %cst_13 : f32 to vector<8x32xf32>
    %17 = arith.mulf %16, %14 : vector<8x32xf32>
    %18 = math.exp %17 : vector<8x32xf32>
    %19 = arith.mulf %15, %18 : vector<8x32xf32>
    %20 = arith.addf %13, %19 : vector<8x32xf32>
    %c0_14 = arith.constant 0 : index
    %c0_15 = arith.constant 0 : index
    %21 = vector.load %arg7[%c0_14, %c0_15] : memref<32x256xf32, #tpu.memory_space<vmem>>, vector<32x256xf32>
    %cst_16 = arith.constant dense<0.000000e+00> : vector<8x256xf32>
    %22 = tpu.matmul %20, %21, %cst_16 {dimension_numbers = #tpu.dot_dimension_numbers<[1], [0], [0], [1], [0, 0, 1, 1], [], []>} : vector<8x32xf32>, vector<32x256xf32>, vector<8x256xf32> -> vector<8x256xf32>
    %c0_17 = arith.constant 0 : index
    %c0_18 = arith.constant 0 : index
    %23 = vector.load %arg8[%c0_17, %c0_18] : memref<1x256xf32, #tpu.memory_space<vmem>>, vector<1x256xf32>
    %24 = vector.broadcast %23 : vector<1x256xf32> to vector<8x256xf32>
    %25 = arith.addf %22, %24 : vector<8x256xf32>
    %cst_19 = arith.constant 0.000000e+00 : f32
    %26 = vector.broadcast %cst_19 : f32 to vector<8x256xf32>
    %27 = arith.maximumf %25, %26 : vector<8x256xf32>
    %c0_20 = arith.constant 0 : index
    %c0_21 = arith.constant 0 : index
    %28 = vector.load %arg9[%c0_20, %c0_21] : memref<256x896xf32, #tpu.memory_space<vmem>>, vector<256x896xf32>
    %cst_22 = arith.constant dense<0.000000e+00> : vector<8x896xf32>
    %29 = tpu.matmul %27, %28, %cst_22 {dimension_numbers = #tpu.dot_dimension_numbers<[1], [0], [0], [1], [0, 0, 1, 1], [], []>} : vector<8x256xf32>, vector<256x896xf32>, vector<8x896xf32> -> vector<8x896xf32>
    %c0_23 = arith.constant 0 : index
    %c0_24 = arith.constant 0 : index
    %30 = vector.load %arg10[%c0_23, %c0_24] : memref<1x896xf32, #tpu.memory_space<vmem>>, vector<1x896xf32>
    %31 = vector.broadcast %30 : vector<1x896xf32> to vector<8x896xf32>
    %32 = arith.addf %29, %31 : vector<8x896xf32>
    %33 = arith.negf %32 : vector<8x896xf32>
    %34 = math.exp %33 : vector<8x896xf32>
    %cst_25 = arith.constant 1.000000e+00 : f32
    %35 = vector.broadcast %cst_25 : f32 to vector<8x896xf32>
    %36 = arith.addf %35, %34 : vector<8x896xf32>
    %37 = arith.divf %35, %36 : vector<8x896xf32>
    %c0_26 = arith.constant 0 : index
    %c0_27 = arith.constant 0 : index
    %38 = vector.load %arg11[%c0_26, %c0_27] : memref<8x896xf32, #tpu.memory_space<vmem>>, vector<8x896xf32>
    tpu.vector_store %arg11[%c0_26, %c0_27], %37 {strides = array<i32>} : memref<8x896xf32, #tpu.memory_space<vmem>>, vector<8x896xf32>,
    %c0_28 = arith.constant 0 : index
    %c0_29 = arith.constant 0 : index
    %39 = vector.load %arg12[%c0_28, %c0_29] : memref<8x128xf32, #tpu.memory_space<vmem>>, vector<8x128xf32>
    tpu.vector_store %arg12[%c0_28, %c0_29], %12 {strides = array<i32>} : memref<8x128xf32, #tpu.memory_space<vmem>>, vector<8x128xf32>,
    return
  }
  func.func @transform_0(%arg0: i32) -> (i32, i32) {
    %c0_i32 = arith.constant 0 : i32
    %c0_i32_0 = arith.constant 0 : i32
    return %arg0, %c0_i32 : i32, i32
  }
  func.func @transform_1(%arg0: i32) -> (i32, i32) {
    %c0_i32 = arith.constant 0 : i32
    %c0_i32_0 = arith.constant 0 : i32
    return %arg0, %c0_i32 : i32, i32
  }
  func.func @transform_2(%arg0: i32) -> (i32, i32) {
    %c0_i32 = arith.constant 0 : i32
    %c0_i32_0 = arith.constant 0 : i32
    %c0_i32_1 = arith.constant 0 : i32
    return %c0_i32, %c0_i32_0 : i32, i32
  }
  func.func @transform_3(%arg0: i32) -> (i32, i32) {
    %c0_i32 = arith.constant 0 : i32
    %c0_i32_0 = arith.constant 0 : i32
    %c0_i32_1 = arith.constant 0 : i32
    return %c0_i32, %c0_i32_0 : i32, i32
  }
  func.func @transform_4(%arg0: i32) -> (i32, i32) {
    %c0_i32 = arith.constant 0 : i32
    %c0_i32_0 = arith.constant 0 : i32
    %c0_i32_1 = arith.constant 0 : i32
    return %c0_i32, %c0_i32_0 : i32, i32
  }
  func.func @transform_5(%arg0: i32) -> (i32, i32) {
    %c0_i32 = arith.constant 0 : i32
    %c0_i32_0 = arith.constant 0 : i32
    %c0_i32_1 = arith.constant 0 : i32
    return %c0_i32, %c0_i32_0 : i32, i32
  }
  func.func @transform_6(%arg0: i32) -> (i32, i32) {
    %c0_i32 = arith.constant 0 : i32
    %c0_i32_0 = arith.constant 0 : i32
    %c0_i32_1 = arith.constant 0 : i32
    return %c0_i32, %c0_i32_0 : i32, i32
  }
  func.func @transform_7(%arg0: i32) -> (i32, i32) {
    %c0_i32 = arith.constant 0 : i32
    %c0_i32_0 = arith.constant 0 : i32
    %c0_i32_1 = arith.constant 0 : i32
    return %c0_i32, %c0_i32_0 : i32, i32
  }
  func.func @transform_8(%arg0: i32) -> (i32, i32) {
    %c0_i32 = arith.constant 0 : i32
    %c0_i32_0 = arith.constant 0 : i32
    %c0_i32_1 = arith.constant 0 : i32
    return %c0_i32, %c0_i32_0 : i32, i32
  }
  func.func @transform_9(%arg0: i32) -> (i32, i32) {
    %c0_i32 = arith.constant 0 : i32
    %c0_i32_0 = arith.constant 0 : i32
    %c0_i32_1 = arith.constant 0 : i32
    return %c0_i32, %c0_i32_0 : i32, i32
  }
  func.func @transform_10(%arg0: i32) -> (i32, i32) {
    %c0_i32 = arith.constant 0 : i32
    %c0_i32_0 = arith.constant 0 : i32
    return %arg0, %c0_i32 : i32, i32
  }
  func.func @transform_11(%arg0: i32) -> (i32, i32) {
    %c0_i32 = arith.constant 0 : i32
    %c0_i32_0 = arith.constant 0 : i32
    return %arg0, %c0_i32 : i32, i32
  }
}

</mosaic_0001>

<bundles_post_ra>
// kernel: vae_forward.1
= control target key start
LH: loop header
LB: loop body
LE: loop exit
PB: predicated region body
PF: predicated region fallthrough
CT: control target
= control target key end

     0   :  { %vm252_vm0 = vcmask 130048   ;;  %s1473_s17 = smov 96   ;;  %vm681_vm1 = vcmask 261120   ;;  %s3006_s2 = inlined_call_operand.vmem [shape: f32[784,256], index: 2, kind: input, shape index: {}]   ;;  %s3007_s0 = inlined_call_operand.vmem [shape: f32[8,784], index: 0, kind: input, shape index: {}]   ;;  %s3008_s4 = inlined_call_operand.vmem [shape: f32[256,128], index: 4, kind: input, shape index: {}]   ;;  %s3009_s3 = inlined_call_operand.vmem [shape: f32[1,256], index: 3, kind: input, shape index: {}]   ;;  %s3010_s6 = inlined_call_operand.vmem [shape: f32[32,256], index: 6, kind: input, shape index: {}]   ;;  %s3011_s5 = inlined_call_operand.vmem [shape: f32[1,128], index: 5, kind: input, shape index: {}]   ;;  %s3012_s11 = inlined_call_operand.vmem [shape: f32[8,128], index: 11, kind: output, shape index: {1}]   ;;  %s3013_s8 = inlined_call_operand.vmem [shape: f32[256,896], index: 8, kind: input, shape index: {}]   ;;  %s3014_s1 = inlined_call_operand.vmem [shape: f32[8,32], index: 1, kind: input, shape index: {}]   ;;  %s3015_s7 = inlined_call_operand.vmem [shape: f32[1,256], index: 7, kind: input, shape index: {}]   ;;  %s3016_s9 = inlined_call_operand.vmem [shape: f32[1,896], index: 9, kind: input, shape index: {}]   ;;  %s3017_s10 = inlined_call_operand.vmem [shape: f32[8,896], index: 10, kind: output, shape index: {0}]  }
   0x1   :  { %v75_v0 = vld [vmem:[%s3006_s2 + $0xf8] sm:$0xff]  ;;  %v74_v1 = vld [vmem:[%s3006_s2 + $0xf0] sm:$0xff]  ;;  %v73_v2 = vld [vmem:[%s3006_s2 + $0xe8] sm:$0xff] }
   0x2   :  { %256 = vmatprep.subr.mxu0 %v75_v0  ;;  %v139_v3 = vld [vmem:[%s3006_s2 + $0x2f8] sm:$0xff]  ;;  %v72_v4 = vld [vmem:[%s3006_s2 + $0xe0] sm:$0xff]  ;;  %v138_v5 = vld [vmem:[%s3006_s2 + $0x2f0] sm:$0xff] }
   0x3   :  { %257 = vmatpush1.msra.mxu0 %v74_v1  ;;  %327 = vmatprep.subr.mxu1 %v139_v3  ;;  %v71_v6 = vld [vmem:[%s3006_s2 + $0xd8] sm:$0xff]  ;;  %v137_v7 = vld [vmem:[%s3006_s2 + $0x2e8] sm:$0xff]  ;;  %v70_v8 = vld [vmem:[%s3006_s2 + $0xd0] sm:$0xff] }
   0x4   :  { %258 = vmatprep.subr.mxu0 %v73_v2  ;;  %328 = vmatpush1.msra.mxu1 %v138_v5  ;;  %v136_v9 = vld [vmem:[%s3006_s2 + $0x2e0] sm:$0xff]  ;;  %v135_v10 = vld [vmem:[%s3006_s2 + $0x2d8] sm:$0xff]  ;;  %v69_v11 = vld [vmem:[%s3006_s2 + $0xc8] sm:$0xff] }
   0x5   :  { %259 = vmatpush1.msra.mxu0 %v72_v4  ;;  %329 = vmatprep.subr.mxu1 %v137_v7  ;;  %v134_v12 = vld [vmem:[%s3006_s2 + $0x2d0] sm:$0xff]  ;;  %v68_v13 = vld [vmem:[%s3006_s2 + $0xc0] sm:$0xff]  ;;  %v133_v14 = vld [vmem:[%s3006_s2 + $0x2c8] sm:$0xff] }
   0x6   :  { %260 = vmatprep.subr.mxu0 %v71_v6  ;;  %330 = vmatpush1.msra.mxu1 %v136_v9  ;;  %v67_v15 = vld [vmem:[%s3006_s2 + $0xb8] sm:$0xff]  ;;  %v132_v16 = vld [vmem:[%s3006_s2 + $0x2c0] sm:$0xff]  ;;  %v66_v17 = vld [vmem:[%s3006_s2 + $0xb0] sm:$0xff] }
   0x7   :  { %261 = vmatpush1.msra.mxu0 %v70_v8  ;;  %331 = vmatprep.subr.mxu1 %v135_v10  ;;  %v131_v18 = vld [vmem:[%s3006_s2 + $0x2b8] sm:$0xff]  ;;  %v65_v19 = vld [vmem:[%s3006_s2 + $0xa8] sm:$0xff]  ;;  %v130_v20 = vld [vmem:[%s3006_s2 + $0x2b0] sm:$0xff] }
   0x8   :  { %262 = vmatprep.subr.mxu0 %v69_v11  ;;  %332 = vmatpush1.msra.mxu1 %v134_v12  ;;  %v64_v21 = vld [vmem:[%s3006_s2 + $0xa0] sm:$0xff]  ;;  %v129_v22 = vld [vmem:[%s3006_s2 + $0x2a8] sm:$0xff]  ;;  %v63_v23 = vld [vmem:[%s3006_s2 + $0x98] sm:$0xff] }
   0x9   :  { %263 = vmatpush1.msra.mxu0 %v68_v13  ;;  %333 = vmatprep.subr.mxu1 %v133_v14  ;;  %v128_v24 = vld [vmem:[%s3006_s2 + $0x2a0] sm:$0xff]  ;;  %v62_v25 = vld [vmem:[%s3006_s2 + $0x90] sm:$0xff]  ;;  %v127_v26 = vld [vmem:[%s3006_s2 + $0x298] sm:$0xff] }
   0xa   :  { %264 = vmatprep.subr.mxu0 %v67_v15  ;;  %334 = vmatpush1.msra.mxu1 %v132_v16  ;;  %v61_v27 = vld [vmem:[%s3006_s2 + $0x88] sm:$0xff]  ;;  %v126_v28 = vld [vmem:[%s3006_s2 + $0x290] sm:$0xff]  ;;  %v60_v29 = vld [vmem:[%s3006_s2 + $0x80] sm:$0xff] }
   0xb   :  { %265 = vmatpush1.msra.mxu0 %v66_v17  ;;  %335 = vmatprep.subr.mxu1 %v131_v18  ;;  %v125_v30 = vld [vmem:[%s3006_s2 + $0x288] sm:$0xff]  ;;  %v59_v31 = vld [vmem:[%s3006_s2 + $0x78] sm:$0xff]  ;;  %v124_v32 = vld [vmem:[%s3006_s2 + $0x280] sm:$0xff] }
   0xc   :  { %266 = vmatprep.subr.mxu0 %v65_v19  ;;  %336 = vmatpush1.msra.mxu1 %v130_v20  ;;  %v58_v33 = vld [vmem:[%s3006_s2 + $0x70] sm:$0xff]  ;;  %v123_v34 = vld [vmem:[%s3006_s2 + $0x278] sm:$0xff]  ;;  %v57_v35 = vld [vmem:[%s3006_s2 + $0x68] sm:$0xff] }
   0xd   :  { %267 = vmatpush1.msra.mxu0 %v64_v21  ;;  %337 = vmatprep.subr.mxu1 %v129_v22  ;;  %v122_v36 = vld [vmem:[%s3006_s2 + $0x270] sm:$0xff]  ;;  %v56_v37 = vld [vmem:[%s3006_s2 + $0x60] sm:$0xff]  ;;  %v121_v38 = vld [vmem:[%s3006_s2 + $0x268] sm:$0xff] }
   0xe   :  { %268 = vmatprep.subr.mxu0 %v63_v23  ;;  %338 = vmatpush1.msra.mxu1 %v128_v24  ;;  %v55_v39 = vld [vmem:[%s3006_s2 + $0x58] sm:$0xff]  ;;  %v120_v40 = vld [vmem:[%s3006_s2 + $0x260] sm:$0xff]  ;;  %v54_v41 = vld [vmem:[%s3006_s2 + $0x50] sm:$0xff] }
   0xf   :  { %269 = vmatpush1.msra.mxu0 %v62_v25  ;;  %339 = vmatprep.subr.mxu1 %v127_v26  ;;  %v119_v42 = vld [vmem:[%s3006_s2 + $0x258] sm:$0xff]  ;;  %v53_v43 = vld [vmem:[%s3006_s2 + $0x48] sm:$0xff]  ;;  %v118_v44 = vld [vmem:[%s3006_s2 + $0x250] sm:$0xff] }
  0x10   :  { %270 = vmatprep.subr.mxu0 %v61_v27  ;;  %340 = vmatpush1.msra.mxu1 %v126_v28  ;;  %v52_v45 = vld [vmem:[%s3006_s2 + $0x40] sm:$0xff]  ;;  %v117_v46 = vld [vmem:[%s3006_s2 + $0x248] sm:$0xff]  ;;  %v51_v47 = vld [vmem:[%s3006_s2 + $0x38] sm:$0xff] }
  0x11   :  { %271 = vmatpush1.msra.mxu0 %v60_v29  ;;  %341 = vmatprep.subr.mxu1 %v125_v30  ;;  %v116_v48 = vld [vmem:[%s3006_s2 + $0x240] sm:$0xff]  ;;  %v50_v49 = vld [vmem:[%s3006_s2 + $0x30] sm:$0xff]  ;;  %v115_v50 = vld [vmem:[%s3006_s2 + $0x238] sm:$0xff] }
  0x12   :  { %272 = vmatprep.subr.mxu0 %v59_v31  ;;  %342 = vmatpush1.msra.mxu1 %v124_v32  ;;  %v49_v51 = vld [vmem:[%s3006_s2 + $0x28] sm:$0xff]  ;;  %v114_v52 = vld [vmem:[%s3006_s2 + $0x230] sm:$0xff]  ;;  %v48_v53 = vld [vmem:[%s3006_s2 + $0x20] sm:$0xff] }
  0x13   :  { %273 = vmatpush1.msra.mxu0 %v58_v33  ;;  %343 = vmatprep.subr.mxu1 %v123_v34  ;;  %v113_v54 = vld [vmem:[%s3006_s2 + $0x228] sm:$0xff]  ;;  %v47_v55 = vld [vmem:[%s3006_s2 + $0x18] sm:$0xff]  ;;  %v112_v56 = vld [vmem:[%s3006_s2 + $0x220] sm:$0xff] }
  0x14   :  { %274 = vmatprep.subr.mxu0 %v57_v35  ;;  %344 = vmatpush1.msra.mxu1 %v122_v36  ;;  %v46_v57 = vld [vmem:[%s3006_s2 + $0x10] sm:$0xff]  ;;  %v111_v58 = vld [vmem:[%s3006_s2 + $0x218] sm:$0xff]  ;;  %v45_v59 = vld [vmem:[%s3006_s2 + $0x8] sm:$0xff] }
  0x15   :  { %275 = vmatpush1.msra.mxu0 %v56_v37  ;;  %345 = vmatprep.subr.mxu1 %v121_v38  ;;  %v110_v60 = vld [vmem:[%s3006_s2 + $0x210] sm:$0xff]  ;;  %v44_v61 = vld [vmem:[%s3006_s2] sm:$0xff]  ;;  %v109_v62 = vld [vmem:[%s3006_s2 + $0x208] sm:$0xff] }
  0x16   :  { %276 = vmatprep.subr.mxu0 %v55_v39  ;;  %346 = vmatpush1.msra.mxu1 %v120_v40  ;;  %v107_v63 = vld [vmem:[%s3006_s2 + $0x1f8] sm:$0xff]  ;;  %v108_v0 = vld [vmem:[%s3006_s2 + $0x200] sm:$0xff]  ;;  %v106_v1 = vld [vmem:[%s3006_s2 + $0x1f0] sm:$0xff] }
  0x17   :  { %277 = vmatpush1.msra.mxu0 %v54_v41  ;;  %347 = vmatprep.subr.mxu1 %v119_v42  ;;  %v171_v2 = vld [vmem:[%s3006_s2 + $0x3f8] sm:$0xff]  ;;  %v105_v3 = vld [vmem:[%s3006_s2 + $0x1e8] sm:$0xff]  ;;  %v170_v4 = vld [vmem:[%s3006_s2 + $0x3f0] sm:$0xff] }
  0x18   :  { %278 = vmatprep.subr.mxu0 %v53_v43  ;;  %348 = vmatpush1.msra.mxu1 %v118_v44  ;;  %v104_v5 = vld [vmem:[%s3006_s2 + $0x1e0] sm:$0xff]  ;;  %v169_v6 = vld [vmem:[%s3006_s2 + $0x3e8] sm:$0xff]  ;;  %v103_v7 = vld [vmem:[%s3006_s2 + $0x1d8] sm:$0xff] }
  0x19   :  { %279 = vmatpush1.msra.mxu0 %v52_v45  ;;  %349 = vmatprep.subr.mxu1 %v117_v46  ;;  %v168_v8 = vld [vmem:[%s3006_s2 + $0x3e0] sm:$0xff]  ;;  %v102_v9 = vld [vmem:[%s3006_s2 + $0x1d0] sm:$0xff]  ;;  %v167_v10 = vld [vmem:[%s3006_s2 + $0x3d8] sm:$0xff] }
  0x1a   :  { %280 = vmatprep.subr.mxu0 %v51_v47  ;;  %350 = vmatpush1.msra.mxu1 %v116_v48  ;;  %v101_v11 = vld [vmem:[%s3006_s2 + $0x1c8] sm:$0xff]  ;;  %v166_v12 = vld [vmem:[%s3006_s2 + $0x3d0] sm:$0xff]  ;;  %v100_v13 = vld [vmem:[%s3006_s2 + $0x1c0] sm:$0xff] }
  0x1b   :  { %281 = vmatpush1.msra.mxu0 %v50_v49  ;;  %351 = vmatprep.subr.mxu1 %v115_v50  ;;  %v165_v14 = vld [vmem:[%s3006_s2 + $0x3c8] sm:$0xff]  ;;  %v99_v15 = vld [vmem:[%s3006_s2 + $0x1b8] sm:$0xff]  ;;  %v164_v16 = vld [vmem:[%s3006_s2 + $0x3c0] sm:$0xff] }
  0x1c   :  { %282 = vmatprep.subr.mxu0 %v49_v51  ;;  %352 = vmatpush1.msra.mxu1 %v114_v52  ;;  %v98_v17 = vld [vmem:[%s3006_s2 + $0x1b0] sm:$0xff]  ;;  %v163_v18 = vld [vmem:[%s3006_s2 + $0x3b8] sm:$0xff]  ;;  %v97_v19 = vld [vmem:[%s3006_s2 + $0x1a8] sm:$0xff] }
  0x1d   :  { %283 = vmatpush1.msra.mxu0 %v48_v53  ;;  %353 = vmatprep.subr.mxu1 %v113_v54  ;;  %v162_v20 = vld [vmem:[%s3006_s2 + $0x3b0] sm:$0xff]  ;;  %v96_v21 = vld [vmem:[%s3006_s2 + $0x1a0] sm:$0xff]  ;;  %v161_v22 = vld [vmem:[%s3006_s2 + $0x3a8] sm:$0xff] }
  0x1e   :  { %284 = vmatprep.subr.mxu0 %v47_v55  ;;  %354 = vmatpush1.msra.mxu1 %v112_v56  ;;  %v95_v23 = vld [vmem:[%s3006_s2 + $0x198] sm:$0xff]  ;;  %v160_v24 = vld [vmem:[%s3006_s2 + $0x3a0] sm:$0xff]  ;;  %v94_v25 = vld [vmem:[%s3006_s2 + $0x190] sm:$0xff] }
  0x1f   :  { %285 = vmatpush1.msra.mxu0 %v46_v57  ;;  %355 = vmatprep.subr.mxu1 %v111_v58  ;;  %v159_v26 = vld [vmem:[%s3006_s2 + $0x398] sm:$0xff]  ;;  %v93_v27 = vld [vmem:[%s3006_s2 + $0x188] sm:$0xff]  ;;  %v158_v28 = vld [vmem:[%s3006_s2 + $0x390] sm:$0xff] }
  0x20   :  { %286 = vmatprep.subr.mxu0 %v45_v59  ;;  %356 = vmatpush1.msra.mxu1 %v110_v60  ;;  %v92_v29 = vld [vmem:[%s3006_s2 + $0x180] sm:$0xff]  ;;  %v157_v30 = vld [vmem:[%s3006_s2 + $0x388] sm:$0xff]  ;;  %v91_v31 = vld [vmem:[%s3006_s2 + $0x178] sm:$0xff] }
  0x21   :  { %287 = vmatpush1.msra.mxu0 %v44_v61  ;;  %357 = vmatprep.subr.mxu1 %v109_v62  ;;  %v156_v32 = vld [vmem:[%s3006_s2 + $0x380] sm:$0xff]  ;;  %v90_v33 = vld [vmem:[%s3006_s2 + $0x170] sm:$0xff]  ;;  %v155_v34 = vld [vmem:[%s3006_s2 + $0x378] sm:$0xff] }
  0x22   :  { %288 = vmatprep.subr.mxu0 %v107_v63  ;;  %358 = vmatpush1.msra.mxu1 %v108_v0  ;;  %v89_v35 = vld [vmem:[%s3006_s2 + $0x168] sm:$0xff]  ;;  %v154_v36 = vld [vmem:[%s3006_s2 + $0x370] sm:$0xff]  ;;  %v88_v37 = vld [vmem:[%s3006_s2 + $0x160] sm:$0xff] }
  0x23   :  { %289 = vmatpush2.msra.mxu0 %v106_v1  ;;  %359 = vmatprep.subr.mxu1 %v171_v2  ;;  %v153_v38 = vld [vmem:[%s3006_s2 + $0x368] sm:$0xff]  ;;  %v87_v39 = vld [vmem:[%s3006_s2 + $0x158] sm:$0xff]  ;;  %v152_v40 = vld [vmem:[%s3006_s2 + $0x360] sm:$0xff] }
  0x24   :  { %290 = vmatprep.subr.mxu0 %v105_v3  ;;  %360 = vmatpush2.msra.mxu1 %v170_v4  ;;  %v86_v41 = vld [vmem:[%s3006_s2 + $0x150] sm:$0xff]  ;;  %v151_v42 = vld [vmem:[%s3006_s2 + $0x358] sm:$0xff]  ;;  %v85_v43 = vld [vmem:[%s3006_s2 + $0x148] sm:$0xff] }
  0x25   :  { %291 = vmatpush2.msra.mxu0 %v104_v5  ;;  %361 = vmatprep.subr.mxu1 %v169_v6  ;;  %v150_v44 = vld [vmem:[%s3006_s2 + $0x350] sm:$0xff]  ;;  %v84_v45 = vld [vmem:[%s3006_s2 + $0x140] sm:$0xff]  ;;  %v149_v46 = vld [vmem:[%s3006_s2 + $0x348] sm:$0xff] }
  0x26   :  { %292 = vmatprep.subr.mxu0 %v103_v7  ;;  %362 = vmatpush2.msra.mxu1 %v168_v8  ;;  %v83_v47 = vld [vmem:[%s3006_s2 + $0x138] sm:$0xff]  ;;  %v148_v48 = vld [vmem:[%s3006_s2 + $0x340] sm:$0xff]  ;;  %v82_v49 = vld [vmem:[%s3006_s2 + $0x130] sm:$0xff] }
  0x27   :  { %293 = vmatpush2.msra.mxu0 %v102_v9  ;;  %363 = vmatprep.subr.mxu1 %v167_v10  ;;  %v147_v50 = vld [vmem:[%s3006_s2 + $0x338] sm:$0xff]  ;;  %v81_v51 = vld [vmem:[%s3006_s2 + $0x128] sm:$0xff]  ;;  %v146_v52 = vld [vmem:[%s3006_s2 + $0x330] sm:$0xff] }
  0x28   :  { %294 = vmatprep.subr.mxu0 %v101_v11  ;;  %364 = vmatpush2.msra.mxu1 %v166_v12  ;;  %v80_v53 = vld [vmem:[%s3006_s2 + $0x120] sm:$0xff]  ;;  %v145_v54 = vld [vmem:[%s3006_s2 + $0x328] sm:$0xff]  ;;  %v79_v55 = vld [vmem:[%s3006_s2 + $0x118] sm:$0xff] }
  0x29   :  { %295 = vmatpush2.msra.mxu0 %v100_v13  ;;  %365 = vmatprep.subr.mxu1 %v165_v14  ;;  %v144_v56 = vld [vmem:[%s3006_s2 + $0x320] sm:$0xff]  ;;  %v78_v57 = vld [vmem:[%s3006_s2 + $0x110] sm:$0xff]  ;;  %v143_v58 = vld [vmem:[%s3006_s2 + $0x318] sm:$0xff] }
  0x2a   :  { %296 = vmatprep.subr.mxu0 %v99_v15  ;;  %366 = vmatpush2.msra.mxu1 %v164_v16  ;;  %v77_v59 = vld [vmem:[%s3006_s2 + $0x108] sm:$0xff]  ;;  %v76_v61 = vld [vmem:[%s3006_s2 + $0x100] sm:$0xff]  ;;  %v142_v62 = vld [vmem:[%s3006_s2 + $0x310] sm:$0xff] }
  0x2b   :  { %297 = vmatpush2.msra.mxu0 %v98_v17  ;;  %367 = vmatprep.subr.mxu1 %v163_v18  ;;  %v38_v60 = vld [vmem:[%s3007_s0 + $0x8] sm:$0xff]  ;;  %v37_v63 = vld [vmem:[%s3007_s0] sm:$0xff]  ;;  %v203_v1 = vld [vmem:[%s3006_s2 + $0x4f8] sm:$0xff] }
  0x2c   :  { %298 = vmatprep.subr.mxu0 %v97_v19  ;;  %368 = vmatpush2.msra.mxu1 %v162_v20  ;;  %v141_v0 = vld [vmem:[%s3006_s2 + $0x308] sm:$0xff]  ;;  %v140_v2 = vld [vmem:[%s3006_s2 + $0x300] sm:$0xff]  ;;  %v40_v3 = vld [vmem:[%s3007_s0 + $0x18] sm:$0xff] }
  0x2d   :  { %299 = vmatpush2.msra.mxu0 %v96_v21  ;;  %369 = vmatprep.subr.mxu1 %v161_v22  ;;  %v202_v4 = vld [vmem:[%s3006_s2 + $0x4f0] sm:$0xff]  ;;  %v201_v6 = vld [vmem:[%s3006_s2 + $0x4e8] sm:$0xff]  ;;  %v200_v7 = vld [vmem:[%s3006_s2 + $0x4e0] sm:$0xff] }
  0x2e   :  { %300 = vmatprep.subr.mxu0 %v95_v23  ;;  %370 = vmatpush2.msra.mxu1 %v160_v24  ;;  %v39_v5 = vld [vmem:[%s3007_s0 + $0x10] sm:$0xff]  ;;  %v42_v8 = vld [vmem:[%s3007_s0 + $0x28] sm:$0xff]  ;;  %v199_v9 = vld [vmem:[%s3006_s2 + $0x4d8] sm:$0xff] }
  0x2f   :  { %301 = vmatpush2.msra.mxu0 %v94_v25  ;;  %371 = vmatprep.subr.mxu1 %v159_v26  ;;  %v198_v10 = vld [vmem:[%s3006_s2 + $0x4d0] sm:$0xff]  ;;  %v197_v11 = vld [vmem:[%s3006_s2 + $0x4c8] sm:$0xff]  ;;  %v196_v12 = vld [vmem:[%s3006_s2 + $0x4c0] sm:$0xff] }
  0x30   :  { %302 = vmatprep.subr.mxu0 %v93_v27  ;;  %372 = vmatpush2.msra.mxu1 %v158_v28  ;;  %v195_v13 = vld [vmem:[%s3006_s2 + $0x4b8] sm:$0xff]  ;;  %v194_v14 = vld [vmem:[%s3006_s2 + $0x4b0] sm:$0xff]  ;;  %v193_v15 = vld [vmem:[%s3006_s2 + $0x4a8] sm:$0xff] }
  0x31   :  { %303 = vmatpush2.msra.mxu0 %v92_v29  ;;  %373 = vmatprep.subr.mxu1 %v157_v30  ;;  %v192_v16 = vld [vmem:[%s3006_s2 + $0x4a0] sm:$0xff]  ;;  %v191_v17 = vld [vmem:[%s3006_s2 + $0x498] sm:$0xff]  ;;  %v190_v18 = vld [vmem:[%s3006_s2 + $0x490] sm:$0xff] }
  0x32   :  { %304 = vmatprep.subr.mxu0 %v91_v31  ;;  %374 = vmatpush2.msra.mxu1 %v156_v32  ;;  %v189_v19 = vld [vmem:[%s3006_s2 + $0x488] sm:$0xff]  ;;  %v188_v20 = vld [vmem:[%s3006_s2 + $0x480] sm:$0xff]  ;;  %v187_v21 = vld [vmem:[%s3006_s2 + $0x478] sm:$0xff] }
  0x33   :  { %305 = vmatpush2.msra.mxu0 %v90_v33  ;;  %375 = vmatprep.subr.mxu1 %v155_v34  ;;  %v186_v22 = vld [vmem:[%s3006_s2 + $0x470] sm:$0xff]  ;;  %v185_v23 = vld [vmem:[%s3006_s2 + $0x468] sm:$0xff]  ;;  %v184_v24 = vld [vmem:[%s3006_s2 + $0x460] sm:$0xff] }
  0x34   :  { %306 = vmatprep.subr.mxu0 %v89_v35  ;;  %376 = vmatpush2.msra.mxu1 %v154_v36  ;;  %v183_v25 = vld [vmem:[%s3006_s2 + $0x458] sm:$0xff]  ;;  %v182_v26 = vld [vmem:[%s3006_s2 + $0x450] sm:$0xff]  ;;  %v181_v27 = vld [vmem:[%s3006_s2 + $0x448] sm:$0xff] }
  0x35   :  { %307 = vmatpush2.msra.mxu0 %v88_v37  ;;  %377 = vmatprep.subr.mxu1 %v153_v38  ;;  %v180_v28 = vld [vmem:[%s3006_s2 + $0x440] sm:$0xff]  ;;  %v179_v29 = vld [vmem:[%s3006_s2 + $0x438] sm:$0xff]  ;;  %v178_v30 = vld [vmem:[%s3006_s2 + $0x430] sm:$0xff] }
  0x36   :  { %308 = vmatprep.subr.mxu0 %v87_v39  ;;  %378 = vmatpush2.msra.mxu1 %v152_v40  ;;  %v177_v31 = vld [vmem:[%s3006_s2 + $0x428] sm:$0xff]  ;;  %v176_v32 = vld [vmem:[%s3006_s2 + $0x420] sm:$0xff]  ;;  %v175_v33 = vld [vmem:[%s3006_s2 + $0x418] sm:$0xff] }
  0x37   :  { %309 = vmatpush2.msra.mxu0 %v86_v41  ;;  %379 = vmatprep.subr.mxu1 %v151_v42  ;;  %v174_v34 = vld [vmem:[%s3006_s2 + $0x410] sm:$0xff]  ;;  %v173_v35 = vld [vmem:[%s3006_s2 + $0x408] sm:$0xff]  ;;  %v172_v36 = vld [vmem:[%s3006_s2 + $0x400] sm:$0xff] }
  0x38   :  { %310 = vmatprep.subr.mxu0 %v85_v43  ;;  %380 = vmatpush2.msra.mxu1 %v150_v44  ;;  %v235_v37 = vld [vmem:[%s3006_s2 + $0x5f8] sm:$0xff]  ;;  %v234_v38 = vld [vmem:[%s3006_s2 + $0x5f0] sm:$0xff]  ;;  %v233_v39 = vld [vmem:[%s3006_s2 + $0x5e8] sm:$0xff] }
  0x39   :  { %311 = vmatpush2.msra.mxu0 %v84_v45  ;;  %381 = vmatprep.subr.mxu1 %v149_v46  ;;  %v232_v40 = vld [vmem:[%s3006_s2 + $0x5e0] sm:$0xff]  ;;  %v231_v41 = vld [vmem:[%s3006_s2 + $0x5d8] sm:$0xff]  ;;  %v230_v42 = vld [vmem:[%s3006_s2 + $0x5d0] sm:$0xff] }
  0x3a   :  { %312 = vmatprep.subr.mxu0 %v83_v47  ;;  %382 = vmatpush2.msra.mxu1 %v148_v48  ;;  %v229_v43 = vld [vmem:[%s3006_s2 + $0x5c8] sm:$0xff]  ;;  %v228_v44 = vld [vmem:[%s3006_s2 + $0x5c0] sm:$0xff]  ;;  %v227_v45 = vld [vmem:[%s3006_s2 + $0x5b8] sm:$0xff] }
  0x3b   :  { %313 = vmatpush2.msra.mxu0 %v82_v49  ;;  %383 = vmatprep.subr.mxu1 %v147_v50  ;;  %v226_v46 = vld [vmem:[%s3006_s2 + $0x5b0] sm:$0xff]  ;;  %v225_v47 = vld [vmem:[%s3006_s2 + $0x5a8] sm:$0xff]  ;;  %v224_v48 = vld [vmem:[%s3006_s2 + $0x5a0] sm:$0xff] }
  0x3c   :  { %314 = vmatprep.subr.mxu0 %v81_v51  ;;  %384 = vmatpush2.msra.mxu1 %v146_v52  ;;  %v223_v49 = vld [vmem:[%s3006_s2 + $0x598] sm:$0xff]  ;;  %v222_v50 = vld [vmem:[%s3006_s2 + $0x590] sm:$0xff]  ;;  %v221_v51 = vld [vmem:[%s3006_s2 + $0x588] sm:$0xff] }
  0x3d   :  { %315 = vmatpush2.msra.mxu0 %v80_v53  ;;  %385 = vmatprep.subr.mxu1 %v145_v54  ;;  %v220_v52 = vld [vmem:[%s3006_s2 + $0x580] sm:$0xff]  ;;  %v219_v53 = vld [vmem:[%s3006_s2 + $0x578] sm:$0xff]  ;;  %v218_v54 = vld [vmem:[%s3006_s2 + $0x570] sm:$0xff] }
  0x3e   :  { %316 = vmatprep.subr.mxu0 %v79_v55  ;;  %386 = vmatpush2.msra.mxu1 %v144_v56  ;;  %v217_v55 = vld [vmem:[%s3006_s2 + $0x568] sm:$0xff]  ;;  %v216_v56 = vld [vmem:[%s3006_s2 + $0x560] sm:$0xff] }
  0x3f   :  { %317 = vmatpush2.msra.mxu0 %v78_v57  ;;  %387 = vmatprep.subr.mxu1 %v143_v58  ;;  %v215_v57 = vld [vmem:[%s3006_s2 + $0x558] sm:$0xff]  ;;  %v214_v58 = vld [vmem:[%s3006_s2 + $0x550] sm:$0xff] }
  0x40   :  { %318 = vmatprep.subr.mxu0 %v77_v59  ;;  %320 = vmatprep.mubr.f32.mxu0 %v38_v60  ;;  %v213_v59 = vld [vmem:[%s3006_s2 + $0x548] sm:$0xff]  ;;  %v212_v60 = vld [vmem:[%s3006_s2 + $0x540] sm:$0xff] }
  0x41   :  { %319 = vmatpush2.msra.mxu0 %v76_v61  ;;  %388 = vmatpush2.msra.mxu1 %v142_v62  ;;  %v211_v61 = vld [vmem:[%s3006_s2 + $0x538] sm:$0xff]  ;;  %v210_v62 = vld [vmem:[%s3006_s2 + $0x530] sm:$0xff] }
  0x42   :  { %321 = vmatmul.mubr.f32.vlgmr.msra.gmra.mxu0 %v37_v63  ;;  %389 = vmatprep.subr.mxu1 %v141_v0  ;;  %v209_v63 = vld [vmem:[%s3006_s2 + $0x528] sm:$0xff]  ;;  %v208_v0 = vld [vmem:[%s3006_s2 + $0x520] sm:$0xff] }
  0x43   :  { %398 = vmatprep.subr.mxu0 %v203_v1  ;;  %390 = vmatpush2.msra.mxu1 %v140_v2  ;;  %v207_v1 = vld [vmem:[%s3006_s2 + $0x518] sm:$0xff]  ;;  %v206_v2 = vld [vmem:[%s3006_s2 + $0x510] sm:$0xff] }
  0x44   :  { %391 = vmatprep.mubr.f32.mxu1 %v40_v3  ;;  %399 = vmatpush1.msra.mxu0 %v202_v4  ;;  %v205_v3 = vld [vmem:[%s3006_s2 + $0x508] sm:$0xff]  ;;  %v204_v4 = vld [vmem:[%s3006_s2 + $0x500] sm:$0xff] }
  0x45   :  { %392 = vmatmul.mubr.f32.vlgmr.msra.gmra.mxu1 %v39_v5  ;;  %400 = vmatprep.subr.mxu0 %v201_v6  ;;  %v41_v5 = vld [vmem:[%s3007_s0 + $0x20] sm:$0xff]  ;;  %v239_v6 = vld [vmem:[%s3006_s2 + $0x618] sm:$0xff] }
  0x46   :  { %401 = vmatpush1.msra.mxu0 %v200_v7  ;;  %462 = vmatprep.mubr.f32.mxu0 %v42_v8  ;;  %v238_v7 = vld [vmem:[%s3006_s2 + $0x610] sm:$0xff]  ;;  %v237_v8 = vld [vmem:[%s3006_s2 + $0x608] sm:$0xff] }
  0x47   :  { %402 = vmatprep.subr.mxu0 %v199_v9  ;;  %v236_v9 = vld [vmem:[%s3006_s2 + $0x600] sm:$0xff] }
  0x48   :  { %403 = vmatpush1.msra.mxu0 %v198_v10  ;;  %v1472_v10 = vmov 0.0  }
  0x49   :  { %404 = vmatprep.subr.mxu0 %v197_v11  ;;  %v43_v11 = vld [vmem:[%s3007_s0 + $0x30] sm:$0xff] }
  0x4a   :  { %405 = vmatpush1.msra.mxu0 %v196_v12  ;;  %v573_v12 = vld [vmem:[%s3008_s4 + $0xf8] sm:$0xff] }
  0x4b   :  { %406 = vmatprep.subr.mxu0 %v195_v13  ;;  %v557_v13 = vld [vmem:[%s3008_s4 + $0x78] sm:$0xff]  ;;  %1370 = vmatprep.subr.mxu1 %v573_v12 }
  0x4c   :  { %407 = vmatpush1.msra.mxu0 %v194_v14  ;;  %v572_v14 = vld [vmem:[%s3008_s4 + $0xf0] sm:$0xff]  ;;  %1371 = vmatpush3.msra.mxu1 %v557_v13 }
  0x4d   :  { %408 = vmatprep.subr.mxu0 %v193_v15  ;;  %v556_v15 = vld [vmem:[%s3008_s4 + $0x70] sm:$0xff]  ;;  %1372 = vmatprep.subr.mxu1 %v572_v14 }
  0x4e   :  { %409 = vmatpush1.msra.mxu0 %v192_v16  ;;  %v571_v16 = vld [vmem:[%s3008_s4 + $0xe8] sm:$0xff]  ;;  %1373 = vmatpush3.msra.mxu1 %v556_v15  ;;  %v665_v15 = vld [vmem:[%s3010_s6 + $0x20] sm:$0xff] }
  0x4f   :  { %410 = vmatprep.subr.mxu0 %v191_v17  ;;  %v555_v17 = vld [vmem:[%s3008_s4 + $0x68] sm:$0xff]  ;;  %1374 = vmatprep.subr.mxu1 %v571_v16  ;;  %v664_v16 = vld [vmem:[%s3010_s6 + $0x18] sm:$0xff] }
  0x50   :  { %411 = vmatpush1.msra.mxu0 %v190_v18  ;;  %v570_v18 = vld [vmem:[%s3008_s4 + $0xe0] sm:$0xff]  ;;  %1375 = vmatpush3.msra.mxu1 %v555_v17  ;;  %v663_v17 = vld [vmem:[%s3010_s6 + $0x10] sm:$0xff] }
  0x51   :  { %412 = vmatprep.subr.mxu0 %v189_v19  ;;  %v554_v19 = vld [vmem:[%s3008_s4 + $0x60] sm:$0xff]  ;;  %1376 = vmatprep.subr.mxu1 %v570_v18  ;;  %v662_v18 = vld [vmem:[%s3010_s6 + $0x8] sm:$0xff] }
  0x52   :  { %413 = vmatpush1.msra.mxu0 %v188_v20  ;;  %v569_v20 = vld [vmem:[%s3008_s4 + $0xd8] sm:$0xff]  ;;  %1377 = vmatpush3.msra.mxu1 %v554_v19  ;;  %v661_v19 = vld [vmem:[%s3010_s6] sm:$0xff] }
  0x53   :  { %414 = vmatprep.subr.mxu0 %v187_v21  ;;  %v553_v21 = vld [vmem:[%s3008_s4 + $0x58] sm:$0xff]  ;;  %1378 = vmatprep.subr.mxu1 %v569_v20  ;;  %v864_v20 = vld [vmem:[%s3013_s8 + $0x350] sm:$0xff] }
  0x54   :  { %415 = vmatpush1.msra.mxu0 %v186_v22  ;;  %v568_v22 = vld [vmem:[%s3008_s4 + $0xd0] sm:$0xff]  ;;  %1379 = vmatpush3.msra.mxu1 %v553_v21  ;;  %v866_v21 = vld [vmem:[%s3013_s8 + $0x360] sm:$0xff] }
  0x55   :  { %416 = vmatprep.subr.mxu0 %v185_v23  ;;  %v552_v23 = vld [vmem:[%s3008_s4 + $0x50] sm:$0xff]  ;;  %1380 = vmatprep.subr.mxu1 %v568_v22  ;;  %v865_v22 = vld [vmem:[%s3013_s8 + $0x358] sm:$0xff] }
  0x56   :  { %417 = vmatpush1.msra.mxu0 %v184_v24  ;;  %v567_v24 = vld [vmem:[%s3008_s4 + $0xc8] sm:$0xff]  ;;  %1381 = vmatpush3.msra.mxu1 %v552_v23 }
  0x57   :  { %418 = vmatprep.subr.mxu0 %v183_v25  ;;  %v551_v25 = vld [vmem:[%s3008_s4 + $0x48] sm:$0xff]  ;;  %1382 = vmatprep.subr.mxu1 %v567_v24  ;;  %v858_v24 = vld [vmem:[%s3013_s8 + $0x320] sm:$0xff] }
  0x58   :  { %419 = vmatpush1.msra.mxu0 %v182_v26  ;;  %v566_v26 = vld [vmem:[%s3008_s4 + $0xc0] sm:$0xff]  ;;  %1383 = vmatpush3.msra.mxu1 %v551_v25  ;;  %v859_v23 = vld [vmem:[%s3013_s8 + $0x328] sm:$0xff]  ;;  %v852_v25 = vld [vmem:[%s3013_s8 + $0x2f0] sm:$0xff] }
  0x59   :  { %420 = vmatprep.subr.mxu0 %v181_v27  ;;  %v550_v27 = vld [vmem:[%s3008_s4 + $0x40] sm:$0xff]  ;;  %1384 = vmatprep.subr.mxu1 %v566_v26  ;;  %v851_v26 = vld [vmem:[%s3013_s8 + $0x2e8] sm:$0xff] }
  0x5a   :  { %421 = vmatpush1.msra.mxu0 %v180_v28  ;;  %v565_v28 = vld [vmem:[%s3008_s4 + $0xb8] sm:$0xff]  ;;  %1385 = vmatpush3.msra.mxu1 %v550_v27 }
  0x5b   :  { %422 = vmatprep.subr.mxu0 %v179_v29  ;;  %v549_v29 = vld [vmem:[%s3008_s4 + $0x38] sm:$0xff]  ;;  %1386 = vmatprep.subr.mxu1 %v565_v28  ;;  %v844_v28 = vld [vmem:[%s3013_s8 + $0x2b0] sm:$0xff] }
  0x5c   :  { %423 = vmatpush1.msra.mxu0 %v178_v30  ;;  %v564_v30 = vld [vmem:[%s3008_s4 + $0xb0] sm:$0xff]  ;;  %1387 = vmatpush3.msra.mxu1 %v549_v29  ;;  %v845_v27 = vld [vmem:[%s3013_s8 + $0x2b8] sm:$0xff] }
  0x5d   :  { %424 = vmatprep.subr.mxu0 %v177_v31  ;;  %v548_v31 = vld [vmem:[%s3008_s4 + $0x30] sm:$0xff]  ;;  %1388 = vmatprep.subr.mxu1 %v564_v30  ;;  %v838_v30 = vld [vmem:[%s3013_s8 + $0x280] sm:$0xff] }
  0x5e   :  { %425 = vmatpush1.msra.mxu0 %v176_v32  ;;  %1389 = vmatpush3.msra.mxu1 %v548_v31  ;;  %v563_v32 = vld [vmem:[%s3008_s4 + $0xa8] sm:$0xff]  ;;  %v837_v31 = vld [vmem:[%s3013_s8 + $0x278] sm:$0xff] }
  0x5f   :  { %426 = vmatprep.subr.mxu0 %v175_v33  ;;  %1390 = vmatprep.subr.mxu1 %v563_v32  ;;  %v547_v33 = vld [vmem:[%s3008_s4 + $0x28] sm:$0xff] }
  0x60   :  { %427 = vmatpush1.msra.mxu0 %v174_v34  ;;  %1391 = vmatpush3.msra.mxu1 %v547_v33  ;;  %v562_v34 = vld [vmem:[%s3008_s4 + $0xa0] sm:$0xff]  ;;  %v831_v32 = vld [vmem:[%s3013_s8 + $0x248] sm:$0xff] }
  0x61   :  { %428 = vmatprep.subr.mxu0 %v173_v35  ;;  %1392 = vmatprep.subr.mxu1 %v562_v34  ;;  %v546_v35 = vld [vmem:[%s3008_s4 + $0x20] sm:$0xff]  ;;  %v824_v34 = vld [vmem:[%s3013_s8 + $0x210] sm:$0xff] }
  0x62   :  { %429 = vmatpush1.msra.mxu0 %v172_v36  ;;  %1393 = vmatpush3.msra.mxu1 %v546_v35  ;;  %v561_v36 = vld [vmem:[%s3008_s4 + $0x98] sm:$0xff]  ;;  %v830_v33 = vld [vmem:[%s3013_s8 + $0x240] sm:$0xff]  ;;  %v823_v35 = vld [vmem:[%s3013_s8 + $0x208] sm:$0xff] }
  0x63   :  { %430 = vmatprep.subr.mxu0 %v235_v37  ;;  %1394 = vmatprep.subr.mxu1 %v561_v36  ;;  %v545_v37 = vld [vmem:[%s3008_s4 + $0x18] sm:$0xff] }
  0x64   :  { %431 = vmatpush2.msra.mxu0 %v234_v38  ;;  %1395 = vmatpush3.msra.mxu1 %v545_v37  ;;  %v560_v38 = vld [vmem:[%s3008_s4 + $0x90] sm:$0xff]  ;;  %v817_v36 = vld [vmem:[%s3013_s8 + $0x1d8] sm:$0xff] }
  0x65   :  { %432 = vmatprep.subr.mxu0 %v233_v39  ;;  %1396 = vmatprep.subr.mxu1 %v560_v38  ;;  %v544_v39 = vld [vmem:[%s3008_s4 + $0x10] sm:$0xff]  ;;  %v810_v38 = vld [vmem:[%s3013_s8 + $0x1a0] sm:$0xff] }
  0x66   :  { %433 = vmatpush2.msra.mxu0 %v232_v40  ;;  %1397 = vmatpush3.msra.mxu1 %v544_v39  ;;  %v559_v40 = vld [vmem:[%s3008_s4 + $0x88] sm:$0xff]  ;;  %v816_v37 = vld [vmem:[%s3013_s8 + $0x1d0] sm:$0xff]  ;;  %v809_v39 = vld [vmem:[%s3013_s8 + $0x198] sm:$0xff] }
  0x67   :  { %434 = vmatprep.subr.mxu0 %v231_v41  ;;  %1398 = vmatprep.subr.mxu1 %v559_v40  ;;  %v543_v41 = vld [vmem:[%s3008_s4 + $0x8] sm:$0xff] }
  0x68   :  { %435 = vmatpush2.msra.mxu0 %v230_v42  ;;  %1399 = vmatpush3.msra.mxu1 %v543_v41  ;;  %v558_v42 = vld [vmem:[%s3008_s4 + $0x80] sm:$0xff]  ;;  %v803_v40 = vld [vmem:[%s3013_s8 + $0x168] sm:$0xff] }
  0x69   :  { %436 = vmatprep.subr.mxu0 %v229_v43  ;;  %v542_v43 = vld [vmem:[%s3008_s4] sm:$0xff]  ;;  %1400 = vmatprep.subr.mxu1 %v558_v42  ;;  %v796_v42 = vld [vmem:[%s3013_s8 + $0x130] sm:$0xff] }
  0x6a   :  { %437 = vmatpush2.msra.mxu0 %v228_v44  ;;  %1401 = vmatpush3.msra.mxu1 %v542_v43  ;;  %v242_v44 = vlaneseq  ;;  %v802_v41 = vld [vmem:[%s3013_s8 + $0x160] sm:$0xff]  ;;  %v795_v43 = vld [vmem:[%s3013_s8 + $0x128] sm:$0xff] }
  0x6b   :  { %438 = vmatprep.subr.mxu0 %v227_v45 }
  0x6c   :  { %439 = vmatpush2.msra.mxu0 %v226_v46  ;;  %v2240_v45 = vshrl.u32 %v242_v44, 7  ;;  %v789_v44 = vld [vmem:[%s3013_s8 + $0xf8] sm:$0xff] }
  0x6d   :  { %440 = vmatprep.subr.mxu0 %v225_v47  ;;  %v240_v47 = vld [vmem:[%s3009_s3] sm:$0x3] }
  0x6e   :  { %441 = vmatpush2.msra.mxu0 %v224_v48  ;;  %v2243_v46 = vsub.s32 0, %v2240_v45  ;;  %v2249_v48 = vsub.s32 1, %v2240_v45 }
  0x6f   :  { %442 = vmatprep.subr.mxu0 %v223_v49 }
  0x70   :  { %443 = vmatpush2.msra.mxu0 %v222_v50  ;;  %v245_v50 = vrot.slane %v240_v47, %v2243_v46 }
  0x71   :  { %444 = vmatprep.subr.mxu0 %v221_v51  ;;  %v249_v51 = vrot.slane %v240_v47, %v2249_v48  ;;  %v788_v47 = vld [vmem:[%s3013_s8 + $0xf0] sm:$0xff] }
  0x72   :  { %445 = vmatpush2.msra.mxu0 %v220_v52 }
  0x73   :  { %446 = vmatprep.subr.mxu0 %v219_v53 }
  0x74   :  { %447 = vmatpush2.msra.mxu0 %v218_v54 }
  0x75   :  { %448 = vmatprep.subr.mxu0 %v217_v55 }
  0x76   :  { %449 = vmatpush2.msra.mxu0 %v216_v56 }
  0x77   :  { %450 = vmatprep.subr.mxu0 %v215_v57 }
  0x78   :  { %451 = vmatpush2.msra.mxu0 %v214_v58 }
  0x79   :  { %452 = vmatprep.subr.mxu0 %v213_v59 }
  0x7a   :  { %453 = vmatpush2.msra.mxu0 %v212_v60 }
  0x7b   :  { %454 = vmatprep.subr.mxu0 %v211_v61 }
  0x7c   :  { %455 = vmatpush2.msra.mxu0 %v210_v62 }
  0x7d   :  { %456 = vmatprep.subr.mxu0 %v209_v63 }
  0x7e   :  { %457 = vmatpush2.msra.mxu0 %v208_v0 }
  0x7f   :  { %458 = vmatprep.subr.mxu0 %v207_v1 }
  0x80   :  { %459 = vmatpush2.msra.mxu0 %v206_v2 }
  0x81   :  { %460 = vmatprep.subr.mxu0 %v205_v3 }
  0x82   :  { %461 = vmatpush2.msra.mxu0 %v204_v4 }
  0x83   :  { %463 = vmatmul.mubr.f32.vlgmr.msra.gmra.mxu0 %v41_v5  ;;  %497 = vmatprep.subr.mxu0 %v239_v6  ;;  %v668_v5 = vld [vmem:[%s3010_s6 + $0x38] sm:$0xff]  ;;  %v667_v6 = vld [vmem:[%s3010_s6 + $0x30] sm:$0xff] }
  0x84   :  { %498 = vmatpush1.msra.mxu0 %v238_v7  ;;  %533 = vmatprep.mubr.f32.mxu0 %v1472_v10  ;;  %v666_v7 = vld [vmem:[%s3010_s6 + $0x28] sm:$0xff] }
  0x85   :  { %499 = vmatprep.subr.mxu0 %v237_v8  ;;  %709 = vmatprep.subr.mxu1 %v668_v5  ;;  %v936_v5 = vld [vmem:[%s3013_s8 + $0x590] sm:$0xff] }
  0x86   :  { %500 = vmatpush1.msra.mxu0 %v236_v9  ;;  %v1361_v9 = vld [vmem:[%s3011_s5] ss:$0 sm:$0xff] }
  0x87   :  { %1360 = vmatmul.mubr.msk.f32.vlgmr.msra.gmra.mxu0 %vm252_vm0, %v43_v11  ;;  %1090 = vmatprep.subr.mxu0 %v866_v21 }
  0x88   :  { %1091 = vmatpush1.msra.mxu0 %v865_v22 }
  0x89   :  { %1092 = vmatprep.subr.mxu0 %v859_v23  ;;  %v863_v23 = vld [vmem:[%s3013_s8 + $0x348] sm:$0xff] }
  0x8a   :  { %1093 = vmatpush1.msra.mxu0 %v858_v24  ;;  %v857_v24 = vld [vmem:[%s3013_s8 + $0x318] sm:$0xff] }
  0x8b   :  { %1094 = vmatprep.subr.mxu0 %v852_v25  ;;  %v856_v25 = vld [vmem:[%s3013_s8 + $0x310] sm:$0xff] }
  0x8c   :  { %1095 = vmatpush1.msra.mxu0 %v851_v26  ;;  %v850_v26 = vld [vmem:[%s3013_s8 + $0x2e0] sm:$0xff] }
  0x8d   :  { %1096 = vmatprep.subr.mxu0 %v845_v27  ;;  %v843_v27 = vld [vmem:[%s3013_s8 + $0x2a8] sm:$0xff] }
  0x8e   :  { %1097 = vmatpush1.msra.mxu0 %v844_v28  ;;  %v842_v28 = vld [vmem:[%s3013_s8 + $0x2a0] sm:$0xff] }
  0x8f   :  { %1098 = vmatprep.subr.mxu0 %v838_v30  ;;  %v835_v30 = vld [vmem:[%s3013_s8 + $0x268] sm:$0xff] }
  0x90   :  { %1099 = vmatpush1.msra.mxu0 %v837_v31  ;;  %v829_v31 = vld [vmem:[%s3013_s8 + $0x238] sm:$0xff] }
  0x91   :  { %1100 = vmatprep.subr.mxu0 %v831_v32  ;;  %v828_v32 = vld [vmem:[%s3013_s8 + $0x230] sm:$0xff] }
  0x92   :  { %1101 = vmatpush1.msra.mxu0 %v830_v33  ;;  %v822_v33 = vld [vmem:[%s3013_s8 + $0x200] sm:$0xff] }
  0x93   :  { %1102 = vmatprep.subr.mxu0 %v824_v34  ;;  %v821_v34 = vld [vmem:[%s3013_s8 + $0x1f8] sm:$0xff] }
  0x94   :  { %1103 = vmatpush1.msra.mxu0 %v823_v35  ;;  %v815_v35 = vld [vmem:[%s3013_s8 + $0x1c8] sm:$0xff] }
  0x95   :  { %1104 = vmatprep.subr.mxu0 %v817_v36  ;;  %v814_v36 = vld [vmem:[%s3013_s8 + $0x1c0] sm:$0xff] }
  0x96   :  { %1105 = vmatpush1.msra.mxu0 %v816_v37  ;;  %v808_v37 = vld [vmem:[%s3013_s8 + $0x190] sm:$0xff] }
  0x97   :  { %1106 = vmatprep.subr.mxu0 %v810_v38  ;;  %v807_v38 = vld [vmem:[%s3013_s8 + $0x188] sm:$0xff] }
  0x98   :  { %1107 = vmatpush1.msra.mxu0 %v809_v39  ;;  %v801_v39 = vld [vmem:[%s3013_s8 + $0x158] sm:$0xff] }
  0x99   :  { %1108 = vmatprep.subr.mxu0 %v803_v40  ;;  %v800_v40 = vld [vmem:[%s3013_s8 + $0x150] sm:$0xff] }
  0x9a   :  { %1109 = vmatpush1.msra.mxu0 %v802_v41  ;;  %v794_v41 = vld [vmem:[%s3013_s8 + $0x120] sm:$0xff] }
  0x9b   :  { %1110 = vmatprep.subr.mxu0 %v796_v42  ;;  %v793_v42 = vld [vmem:[%s3013_s8 + $0x118] sm:$0xff] }
  0x9c   :  { %1111 = vmatpush1.msra.mxu0 %v795_v43  ;;  %v787_v43 = vld [vmem:[%s3013_s8 + $0xe8] sm:$0xff] }
  0x9d   :  { %1112 = vmatprep.subr.mxu0 %v789_v44  ;;  %v786_v44 = vld [vmem:[%s3013_s8 + $0xe0] sm:$0xff] }
  0x9e   :  { %1113 = vmatpush1.msra.mxu0 %v788_v47  ;;  %v780_v47 = vld [vmem:[%s3013_s8 + $0xb0] sm:$0xff] }
 0x102   :  { %v322_v49 = vpop.f32.mrf.mxu0 }
 0x103   :  { %v323_v54 = vadd.f32 %v322_v49, %v245_v50  ;;  %v782_v49 = vld [vmem:[%s3013_s8 + $0xc0] sm:$0xff]  ;;  %v781_v50 = vld [vmem:[%s3013_s8 + $0xb8] sm:$0xff] }
 0x104   :  { %v324_v52 = vpop.f32.mrf.mxu0  ;;  %1114 = vmatprep.subr.mxu0 %v782_v49  ;;  %v779_v49 = vld [vmem:[%s3013_s8 + $0xa8] sm:$0xff] }
 0x105   :  { %v393_v53 = vpop.f32.mrf.mxu1  ;;  %v325_v55 = vadd.f32 %v324_v52, %v249_v51  ;;  %v775_v51 = vld [vmem:[%s3013_s8 + $0x88] sm:$0xff]  ;;  %1115 = vmatpush1.msra.mxu0 %v781_v50  ;;  %v774_v52 = vld [vmem:[%s3013_s8 + $0x80] sm:$0xff]  ;;  %v773_v50 = vld [vmem:[%s3013_s8 + $0x78] sm:$0xff] }
 0x106   :  { %v394_v58 = vadd.f32 %v393_v53, %v323_v54  ;;  %1116 = vmatprep.subr.mxu0 %v775_v51  ;;  %v768_v53 = vld [vmem:[%s3013_s8 + $0x50] sm:$0xff]  ;;  %v767_v54 = vld [vmem:[%s3013_s8 + $0x48] sm:$0xff] }
 0x107   :  { %v395_v56 = vpop.f32.mrf.mxu1  ;;  %1117 = vmatpush1.msra.mxu0 %v774_v52  ;;  %v772_v51 = vld [vmem:[%s3013_s8 + $0x70] sm:$0xff]  ;;  %v766_v52 = vld [vmem:[%s3013_s8 + $0x40] sm:$0xff] }
 0x108   :  { %v396_v60 = vadd.f32 %v395_v56, %v325_v55  ;;  %1118 = vmatprep.subr.mxu0 %v768_v53  ;;  %v761_v55 = vld [vmem:[%s3013_s8 + $0x18] sm:$0xff]  ;;  %v760_v56 = vld [vmem:[%s3013_s8 + $0x10] sm:$0xff] }
 0x109   :  { %1119 = vmatpush1.msra.mxu0 %v767_v54  ;;  %v765_v53 = vld [vmem:[%s3013_s8 + $0x38] sm:$0xff]  ;;  %v759_v54 = vld [vmem:[%s3013_s8 + $0x8] sm:$0xff] }
 0x10a   :  { %1120 = vmatprep.subr.mxu0 %v761_v55  ;;  %v758_v55 = vld [vmem:[%s3013_s8] sm:$0xff] }
 0x10b   :  { %1121 = vmatpush1.msra.mxu0 %v760_v56  ;;  %v976_v56 = vld [vmem:[%s3013_s8 + $0x6d0] sm:$0xff] }
 0x143   :  { %v464_v57 = vpop.f32.mrf.mxu0 }
 0x144   :  { %v465_v61 = vadd.f32 %v464_v57, %v394_v58  ;;  %v978_v57 = vld [vmem:[%s3013_s8 + $0x6e0] sm:$0xff]  ;;  %v977_v58 = vld [vmem:[%s3013_s8 + $0x6d8] sm:$0xff] }
 0x145   :  { %v466_v59 = vpop.f32.mrf.mxu0  ;;  %1122 = vmatprep.subr.mxu0 %v978_v57  ;;  %v975_v57 = vld [vmem:[%s3013_s8 + $0x6c8] sm:$0xff] }
 0x146   :  { %v467_v63 = vadd.f32 %v466_v59, %v396_v60  ;;  %v971_v59 = vld [vmem:[%s3013_s8 + $0x6a8] sm:$0xff]  ;;  %1123 = vmatpush2.msra.mxu0 %v977_v58  ;;  %v970_v60 = vld [vmem:[%s3013_s8 + $0x6a0] sm:$0xff]  ;;  %v969_v58 = vld [vmem:[%s3013_s8 + $0x698] sm:$0xff] }
 0x147   :  { %v535_v62 = vpop.f32.mrf.mxu0  ;;  %1124 = vmatprep.subr.mxu0 %v971_v59  ;;  %v968_v59 = vld [vmem:[%s3013_s8 + $0x690] sm:$0xff] }
 0x148   :  { %v536_v0 = vadd.f32 %v535_v62, %v465_v61  ;;  %v964_v61 = vld [vmem:[%s3013_s8 + $0x670] sm:$0xff]  ;;  %1125 = vmatpush2.msra.mxu0 %v970_v60  ;;  %v963_v62 = vld [vmem:[%s3013_s8 + $0x668] sm:$0xff]  ;;  %v962_v60 = vld [vmem:[%s3013_s8 + $0x660] sm:$0xff] }
 0x149   :  { %v537_v1 = vpop.f32.mrf.mxu0  ;;  %1126 = vmatprep.subr.mxu0 %v964_v61  ;;  %v961_v61 = vld [vmem:[%s3013_s8 + $0x658] sm:$0xff] }
 0x14a   :  { %v538_v2 = vadd.f32 %v537_v1, %v467_v63  ;;  %v540_v4 = vmax.f32 %v536_v0, 0.0  ;;  %v957_v63 = vld [vmem:[%s3013_s8 + $0x638] sm:$0xff]  ;;  %1127 = vmatpush2.msra.mxu0 %v963_v62  ;;  %v956_v0 = vld [vmem:[%s3013_s8 + $0x630] sm:$0xff]  ;;  %v950_v1 = vld [vmem:[%s3013_s8 + $0x600] sm:$0xff] }
 0x14b   :  { %1128 = vmatprep.subr.mxu0 %v957_v63  ;;  %v955_v62 = vld [vmem:[%s3013_s8 + $0x628] sm:$0xff]  ;;  %v954_v63 = vld [vmem:[%s3013_s8 + $0x620] sm:$0xff] }
 0x14c   :  { %v541_v3 = vmax.f32 %v538_v2, 0.0  ;;  %1129 = vmatpush2.msra.mxu0 %v956_v0  ;;  %v949_v2 = vld [vmem:[%s3013_s8 + $0x5f8] sm:$0xff]  ;;  %v948_v0 = vld [vmem:[%s3013_s8 + $0x5f0] sm:$0xff] }
 0x14d   :  { %1130 = vmatprep.subr.mxu0 %v950_v1  ;;  %v947_v1 = vld [vmem:[%s3013_s8 + $0x5e8] sm:$0xff] }
 0x14e   :  { %645 = vmatprep.mubr.f32.mxu1 %v541_v3  ;;  %v943_v3 = vld [vmem:[%s3013_s8 + $0x5c8] sm:$0xff]  ;;  %1131 = vmatpush2.msra.mxu0 %v949_v2  ;;  %v941_v2 = vld [vmem:[%s3013_s8 + $0x5b8] sm:$0xff] }
 0x14f   :  { %646 = vmatmul.mubr.f32.vlgmr.msra.gmra.mxu1 %v540_v4  ;;  %v942_v4 = vld [vmem:[%s3013_s8 + $0x5c0] sm:$0xff]  ;;  %1132 = vmatprep.subr.mxu0 %v943_v3  ;;  %v940_v3 = vld [vmem:[%s3013_s8 + $0x5b0] sm:$0xff] }
 0x150   :  { %749 = vmatprep.mubr.f32.mxu1 %v1472_v10  ;;  %710 = vmatpush1.msra.mxu1 %v667_v6  ;;  %v935_v6 = vld [vmem:[%s3013_s8 + $0x588] sm:$0xff] }
 0x151   :  { %711 = vmatprep.subr.mxu1 %v666_v7  ;;  %1133 = vmatpush2.msra.mxu0 %v942_v4  ;;  %v929_v7 = vld [vmem:[%s3013_s8 + $0x558] sm:$0xff]  ;;  %v934_v4 = vld [vmem:[%s3013_s8 + $0x580] sm:$0xff] }
 0x152   :  { %712 = vmatpush1.msra.mxu1 %v665_v15  ;;  %1134 = vmatprep.subr.mxu0 %v936_v5  ;;  %v907_v15 = vld [vmem:[%s3013_s8 + $0x4a8] sm:$0xff]  ;;  %v933_v5 = vld [vmem:[%s3013_s8 + $0x578] sm:$0xff] }
 0x153   :  { %713 = vmatprep.subr.mxu1 %v664_v16  ;;  %1135 = vmatpush2.msra.mxu0 %v935_v6  ;;  %v901_v16 = vld [vmem:[%s3013_s8 + $0x478] sm:$0xff]  ;;  %v927_v6 = vld [vmem:[%s3013_s8 + $0x548] sm:$0xff] }
 0x154   :  { %714 = vmatpush1.msra.mxu1 %v663_v17  ;;  %1136 = vmatprep.subr.mxu0 %v929_v7  ;;  %v900_v17 = vld [vmem:[%s3013_s8 + $0x470] sm:$0xff]  ;;  %v926_v7 = vld [vmem:[%s3013_s8 + $0x540] sm:$0xff] }
 0x155   :  { %715 = vmatprep.subr.mxu1 %v662_v18  ;;  %v894_v18 = vld [vmem:[%s3013_s8 + $0x440] sm:$0xff] }
 0x156   :  { %716 = vmatpush1.msra.mxu1 %v661_v19  ;;  %v651_v19 = vld [vmem:[%s3014_s1] sm:$0xff] }
 0x157   :  { %1019 = vmatprep.subr.mxu1 %v864_v20 }
 0x20f   :  { %v1402_v8 = vpop.f32.mrf.mxu1 }
 0x211   :  { %v1403_v10 = vpop.f32.mrf.mxu1 }
 0x212   :  { %v1404_v11 = vadd.f32 %v1403_v10, %v1402_v8  ;;  %v928_v8 = vld [vmem:[%s3013_s8 + $0x550] sm:$0xff]  ;;  %v921_v10 = vld [vmem:[%s3013_s8 + $0x518] sm:$0xff] }
 0x213   :  { %1137 = vmatpush2.msra.mxu0 %v928_v8  ;;  %v920_v8 = vld [vmem:[%s3013_s8 + $0x510] sm:$0xff] }
 0x214   :  { %v2266_v12 = vadd.f32 %v1404_v11, %v1361_v9  ;;  %v922_v9 = vld [vmem:[%s3013_s8 + $0x520] sm:$0xff]  ;;  %v915_v11 = vld [vmem:[%s3013_s8 + $0x4e8] sm:$0xff] }
 0x215   :  { %1138 = vmatprep.subr.mxu0 %v922_v9  ;;  %v919_v9 = vld [vmem:[%s3013_s8 + $0x508] sm:$0xff] }
 0x216   :  { %v652_v13 = vmul.f32 0.5, %v2266_v12  ;;  %1351 = vst [vmem:[%s3012_s11] sm:$0xff] %v2266_v12  ;;  %1139 = vmatpush2.msra.mxu0 %v921_v10  ;;  %v913_v10 = vld [vmem:[%s3013_s8 + $0x4d8] sm:$0xff] }
 0x217   :  { %1140 = vmatprep.subr.mxu0 %v915_v11  ;;  %v912_v11 = vld [vmem:[%s3013_s8 + $0x4d0] sm:$0xff] }
 0x218   :  { %v653_v14 = vmul.f32 1.442695, %v652_v13  ;;  %v914_v13 = vld [vmem:[%s3013_s8 + $0x4e0] sm:$0xff] }
 0x219   :  { %1141 = vmatpush2.msra.mxu0 %v914_v13  ;;  %v906_v13 = vld [vmem:[%s3013_s8 + $0x4a0] sm:$0xff] }
 0x21a   :  { %1442 = vpow2.f32 %v653_v14  ;;  %v908_v14 = vld [vmem:[%s3013_s8 + $0x4b0] sm:$0xff] }
 0x21b   :  { %1142 = vmatprep.subr.mxu0 %v908_v14  ;;  %v905_v14 = vld [vmem:[%s3013_s8 + $0x498] sm:$0xff] }
 0x21c   :  { %1143 = vmatpush2.msra.mxu0 %v907_v15  ;;  %v899_v15 = vld [vmem:[%s3013_s8 + $0x468] sm:$0xff] }
 0x21d   :  { %1144 = vmatprep.subr.mxu0 %v901_v16  ;;  %v898_v16 = vld [vmem:[%s3013_s8 + $0x460] sm:$0xff] }
 0x21e   :  { %1145 = vmatpush2.msra.mxu0 %v900_v17  ;;  %v892_v17 = vld [vmem:[%s3013_s8 + $0x430] sm:$0xff] }
 0x21f   :  { %1146 = vmatprep.subr.mxu0 %v894_v18  ;;  %v891_v18 = vld [vmem:[%s3013_s8 + $0x428] sm:$0xff] }
 0x227   :  { %v1443_v29 = vpop.eup %1442 }
 0x228   :  { %656 = vrot.lane.b32.xlu0 %v1443_v29, %s1473_s17  ;;  %v836_v29 = vld [vmem:[%s3013_s8 + $0x270] sm:$0xff] }
 0x29a   :  { %v657_v20 = vpop.permute.xlu0 %656 }
 0x29b   :  { %v659_v21 = vmul.f32 %v657_v20, %v651_v19  ;;  %v893_v19 = vld [vmem:[%s3013_s8 + $0x438] sm:$0xff] }
 0x29c   :  { %1147 = vmatpush2.msra.mxu0 %v893_v19  ;;  %v885_v20 = vld [vmem:[%s3013_s8 + $0x3f8] sm:$0xff]  ;;  %v806_v19 = vld [vmem:[%s3013_s8 + $0x180] sm:$0xff] }
 0x29d   :  { %v660_v22 = vadd.f32 %v659_v21, %v2266_v12  ;;  %v849_v12 = vld [vmem:[%s3013_s8 + $0x2d8] sm:$0xff]  ;;  %v887_v21 = vld [vmem:[%s3013_s8 + $0x408] sm:$0xff] }
 0x29e   :  { %1148 = vmatprep.subr.mxu0 %v887_v21  ;;  %v911_v21 = vld [vmem:[%s3013_s8 + $0x4c8] sm:$0xff] }
 0x29f   :  { %1362 = vmatmul.mubr.msk.f32.vlgmr.msra.gmra.mxu1 %vm681_vm1, %v660_v22  ;;  %v884_v22 = vld [vmem:[%s3013_s8 + $0x3f0] sm:$0xff] }
 0x2a0   :  { %1020 = vmatpush1.msra.mxu1 %v863_v23  ;;  %v886_v23 = vld [vmem:[%s3013_s8 + $0x400] sm:$0xff] }
 0x2a1   :  { %1021 = vmatprep.subr.mxu1 %v857_v24  ;;  %1149 = vmatpush2.msra.mxu0 %v886_v23  ;;  %v878_v24 = vld [vmem:[%s3013_s8 + $0x3c0] sm:$0xff]  ;;  %v799_v23 = vld [vmem:[%s3013_s8 + $0x148] sm:$0xff] }
 0x2a2   :  { %1022 = vmatpush1.msra.mxu1 %v856_v25  ;;  %v880_v25 = vld [vmem:[%s3013_s8 + $0x3d0] sm:$0xff] }
 0x2a3   :  { %1023 = vmatprep.subr.mxu1 %v850_v26  ;;  %1150 = vmatprep.subr.mxu0 %v880_v25  ;;  %v877_v26 = vld [vmem:[%s3013_s8 + $0x3b8] sm:$0xff]  ;;  %v904_v25 = vld [vmem:[%s3013_s8 + $0x490] sm:$0xff] }
 0x2a4   :  { %1024 = vmatpush1.msra.mxu1 %v849_v12  ;;  %v879_v12 = vld [vmem:[%s3013_s8 + $0x3c8] sm:$0xff] }
 0x2a5   :  { %1025 = vmatprep.subr.mxu1 %v843_v27  ;;  %1151 = vmatpush2.msra.mxu0 %v879_v12  ;;  %v871_v27 = vld [vmem:[%s3013_s8 + $0x388] sm:$0xff]  ;;  %v792_v12 = vld [vmem:[%s3013_s8 + $0x110] sm:$0xff] }
 0x2a6   :  { %1026 = vmatpush1.msra.mxu1 %v842_v28  ;;  %v873_v28 = vld [vmem:[%s3013_s8 + $0x398] sm:$0xff] }
 0x2a7   :  { %1027 = vmatprep.subr.mxu1 %v836_v29  ;;  %1152 = vmatprep.subr.mxu0 %v873_v28  ;;  %v870_v29 = vld [vmem:[%s3013_s8 + $0x380] sm:$0xff]  ;;  %v897_v28 = vld [vmem:[%s3013_s8 + $0x458] sm:$0xff] }
 0x2a8   :  { %1028 = vmatpush1.msra.mxu1 %v835_v30  ;;  %v872_v30 = vld [vmem:[%s3013_s8 + $0x390] sm:$0xff] }
 0x2a9   :  { %1029 = vmatprep.subr.mxu1 %v829_v31  ;;  %1153 = vmatpush2.msra.mxu0 %v872_v30  ;;  %v868_v31 = vld [vmem:[%s3013_s8 + $0x370] sm:$0xff]  ;;  %v785_v30 = vld [vmem:[%s3013_s8 + $0xd8] sm:$0xff] }
 0x2aa   :  { %1030 = vmatpush1.msra.mxu1 %v828_v32  ;;  %v981_v32 = vld [vmem:[%s3013_s8 + $0x6f8] sm:$0xff] }
 0x2ab   :  { %1031 = vmatprep.subr.mxu1 %v822_v33  ;;  %1405 = vmatprep.subr.mxu0 %v981_v32  ;;  %v669_v33 = vld [vmem:[%s3015_s7] sm:$0x3] }
 0x2ac   :  { %1032 = vmatpush1.msra.mxu1 %v821_v34  ;;  %v674_v34 = vrot.slane %v669_v33, %v2243_v46  ;;  %v890_v32 = vld [vmem:[%s3013_s8 + $0x420] sm:$0xff] }
 0x2ad   :  { %1033 = vmatprep.subr.mxu1 %v815_v35  ;;  %v678_v35 = vrot.slane %v669_v33, %v2249_v48  ;;  %v776_v33 = vld [vmem:[%s3013_s8 + $0x90] sm:$0xff] }
 0x2ae   :  { %1034 = vmatpush1.msra.mxu1 %v814_v36 }
 0x2af   :  { %1035 = vmatprep.subr.mxu1 %v808_v37 }
 0x2b0   :  { %1036 = vmatpush1.msra.mxu1 %v807_v38 }
 0x2b1   :  { %1037 = vmatprep.subr.mxu1 %v801_v39 }
 0x2b2   :  { %1038 = vmatpush1.msra.mxu1 %v800_v40 }
 0x2b3   :  { %1039 = vmatprep.subr.mxu1 %v794_v41 }
 0x2b4   :  { %1040 = vmatpush1.msra.mxu1 %v793_v42  ;;  %v867_v42 = vld [vmem:[%s3013_s8 + $0x368] sm:$0xff] }
 0x2b5   :  { %1041 = vmatprep.subr.mxu1 %v787_v43  ;;  %v869_v43 = vld [vmem:[%s3013_s8 + $0x378] sm:$0xff] }
 0x2b6   :  { %1042 = vmatpush1.msra.mxu1 %v786_v44  ;;  %v861_v44 = vld [vmem:[%s3013_s8 + $0x338] sm:$0xff] }
 0x2b7   :  { %1043 = vmatprep.subr.mxu1 %v780_v47  ;;  %v974_v47 = vld [vmem:[%s3013_s8 + $0x6c0] sm:$0xff] }
 0x2b8   :  { %1044 = vmatpush1.msra.mxu1 %v779_v49  ;;  %v860_v49 = vld [vmem:[%s3013_s8 + $0x330] sm:$0xff] }
 0x2b9   :  { %1045 = vmatprep.subr.mxu1 %v773_v50  ;;  %v862_v50 = vld [vmem:[%s3013_s8 + $0x340] sm:$0xff] }
 0x2ba   :  { %1046 = vmatpush1.msra.mxu1 %v772_v51  ;;  %v854_v51 = vld [vmem:[%s3013_s8 + $0x300] sm:$0xff] }
 0x2bb   :  { %1047 = vmatprep.subr.mxu1 %v766_v52  ;;  %v967_v52 = vld [vmem:[%s3013_s8 + $0x688] sm:$0xff] }
 0x2bc   :  { %1048 = vmatpush1.msra.mxu1 %v765_v53  ;;  %v853_v53 = vld [vmem:[%s3013_s8 + $0x2f8] sm:$0xff] }
 0x2bd   :  { %1049 = vmatprep.subr.mxu1 %v759_v54  ;;  %v855_v54 = vld [vmem:[%s3013_s8 + $0x308] sm:$0xff] }
 0x2be   :  { %1050 = vmatpush1.msra.mxu1 %v758_v55  ;;  %v847_v55 = vld [vmem:[%s3013_s8 + $0x2c8] sm:$0xff] }
 0x2bf   :  { %1051 = vmatprep.subr.mxu1 %v976_v56  ;;  %v960_v56 = vld [vmem:[%s3013_s8 + $0x650] sm:$0xff] }
 0x2c0   :  { %1052 = vmatpush2.msra.mxu1 %v975_v57  ;;  %v846_v57 = vld [vmem:[%s3013_s8 + $0x2c0] sm:$0xff] }
 0x2c1   :  { %1053 = vmatprep.subr.mxu1 %v969_v58  ;;  %v848_v58 = vld [vmem:[%s3013_s8 + $0x2d0] sm:$0xff] }
 0x2c2   :  { %1054 = vmatpush2.msra.mxu1 %v968_v59  ;;  %v840_v59 = vld [vmem:[%s3013_s8 + $0x290] sm:$0xff] }
 0x2c3   :  { %1055 = vmatprep.subr.mxu1 %v962_v60  ;;  %v953_v60 = vld [vmem:[%s3013_s8 + $0x618] sm:$0xff] }
 0x2c4   :  { %1056 = vmatpush2.msra.mxu1 %v961_v61  ;;  %v839_v61 = vld [vmem:[%s3013_s8 + $0x288] sm:$0xff] }
 0x2c5   :  { %1057 = vmatprep.subr.mxu1 %v955_v62  ;;  %v841_v62 = vld [vmem:[%s3013_s8 + $0x298] sm:$0xff] }
 0x2c6   :  { %1058 = vmatpush2.msra.mxu1 %v954_v63  ;;  %v833_v63 = vld [vmem:[%s3013_s8 + $0x258] sm:$0xff] }
 0x2c7   :  { %1059 = vmatprep.subr.mxu1 %v948_v0  ;;  %v946_v0 = vld [vmem:[%s3013_s8 + $0x5e0] sm:$0xff] }
 0x2c8   :  { %1060 = vmatpush2.msra.mxu1 %v947_v1  ;;  %v832_v1 = vld [vmem:[%s3013_s8 + $0x250] sm:$0xff] }
 0x2c9   :  { %1061 = vmatprep.subr.mxu1 %v941_v2  ;;  %v834_v2 = vld [vmem:[%s3013_s8 + $0x260] sm:$0xff] }
 0x2ca   :  { %1062 = vmatpush2.msra.mxu1 %v940_v3  ;;  %v826_v3 = vld [vmem:[%s3013_s8 + $0x220] sm:$0xff] }
 0x2cb   :  { %1063 = vmatprep.subr.mxu1 %v934_v4  ;;  %v939_v4 = vld [vmem:[%s3013_s8 + $0x5a8] sm:$0xff] }
 0x2cc   :  { %1064 = vmatpush2.msra.mxu1 %v933_v5  ;;  %v825_v5 = vld [vmem:[%s3013_s8 + $0x218] sm:$0xff] }
 0x2cd   :  { %1065 = vmatprep.subr.mxu1 %v927_v6  ;;  %v827_v6 = vld [vmem:[%s3013_s8 + $0x228] sm:$0xff] }
 0x2ce   :  { %1066 = vmatpush2.msra.mxu1 %v926_v7  ;;  %v819_v7 = vld [vmem:[%s3013_s8 + $0x1e8] sm:$0xff] }
 0x2cf   :  { %1067 = vmatprep.subr.mxu1 %v920_v8  ;;  %v932_v8 = vld [vmem:[%s3013_s8 + $0x570] sm:$0xff] }
 0x2d0   :  { %1068 = vmatpush2.msra.mxu1 %v919_v9  ;;  %v818_v9 = vld [vmem:[%s3013_s8 + $0x1e0] sm:$0xff] }
 0x2d1   :  { %1069 = vmatprep.subr.mxu1 %v913_v10  ;;  %v820_v10 = vld [vmem:[%s3013_s8 + $0x1f0] sm:$0xff] }
 0x2d2   :  { %1070 = vmatpush2.msra.mxu1 %v912_v11  ;;  %v812_v11 = vld [vmem:[%s3013_s8 + $0x1b0] sm:$0xff] }
 0x2d3   :  { %1071 = vmatprep.subr.mxu1 %v906_v13  ;;  %v925_v13 = vld [vmem:[%s3013_s8 + $0x538] sm:$0xff] }
 0x2d4   :  { %1072 = vmatpush2.msra.mxu1 %v905_v14  ;;  %v811_v14 = vld [vmem:[%s3013_s8 + $0x1a8] sm:$0xff] }
 0x2d5   :  { %1073 = vmatprep.subr.mxu1 %v899_v15  ;;  %v813_v15 = vld [vmem:[%s3013_s8 + $0x1b8] sm:$0xff] }
 0x2d6   :  { %1074 = vmatpush2.msra.mxu1 %v898_v16  ;;  %v805_v16 = vld [vmem:[%s3013_s8 + $0x178] sm:$0xff] }
 0x2d7   :  { %1075 = vmatprep.subr.mxu1 %v892_v17  ;;  %v918_v17 = vld [vmem:[%s3013_s8 + $0x500] sm:$0xff] }
 0x2d8   :  { %1076 = vmatpush2.msra.mxu1 %v891_v18  ;;  %v804_v18 = vld [vmem:[%s3013_s8 + $0x170] sm:$0xff] }
 0x2d9   :  { %1077 = vmatprep.subr.mxu1 %v885_v20  ;;  %v798_v20 = vld [vmem:[%s3013_s8 + $0x140] sm:$0xff] }
 0x2da   :  { %1078 = vmatpush2.msra.mxu1 %v884_v22  ;;  %v797_v22 = vld [vmem:[%s3013_s8 + $0x138] sm:$0xff] }
 0x2db   :  { %1079 = vmatprep.subr.mxu1 %v878_v24  ;;  %v791_v24 = vld [vmem:[%s3013_s8 + $0x108] sm:$0xff] }
 0x2dc   :  { %1080 = vmatpush2.msra.mxu1 %v877_v26  ;;  %v790_v26 = vld [vmem:[%s3013_s8 + $0x100] sm:$0xff] }
 0x2dd   :  { %1081 = vmatprep.subr.mxu1 %v871_v27  ;;  %v784_v27 = vld [vmem:[%s3013_s8 + $0xd0] sm:$0xff] }
 0x2de   :  { %1082 = vmatpush2.msra.mxu1 %v870_v29  ;;  %v783_v29 = vld [vmem:[%s3013_s8 + $0xc8] sm:$0xff] }
 0x2df   :  { %1161 = vmatprep.subr.mxu1 %v868_v31  ;;  %v777_v31 = vld [vmem:[%s3013_s8 + $0x98] sm:$0xff] }
 0x35f   :  { %v751_v36 = vpop.f32.mrf.mxu1 }
 0x360   :  { %v752_v37 = vadd.f32 %v751_v36, %v674_v34  ;;  %v778_v34 = vld [vmem:[%s3013_s8 + $0xa0] sm:$0xff]  ;;  %v883_v36 = vld [vmem:[%s3013_s8 + $0x3e8] sm:$0xff] }
 0x361   :  { %v753_v38 = vpop.f32.mrf.mxu1 }
 0x362   :  { %v754_v39 = vadd.f32 %v753_v38, %v678_v35  ;;  %v2687_v41 = vmax.f32 %v752_v37, 0.0  ;;  %v770_v35 = vld [vmem:[%s3013_s8 + $0x60] sm:$0xff]  ;;  %v769_v37 = vld [vmem:[%s3013_s8 + $0x58] sm:$0xff]  ;;  %v771_v38 = vld [vmem:[%s3013_s8 + $0x68] sm:$0xff] }
 0x364   :  { %v757_v40 = vmax.f32 %v754_v39, 0.0  ;;  %v763_v39 = vld [vmem:[%s3013_s8 + $0x28] sm:$0xff] }
 0x366   :  { %1083 = vmatprep.mubr.f32.mxu1 %v757_v40  ;;  %1154 = vmatprep.mubr.f32.mxu0 %v757_v40 }
 0x367   :  { %1084 = vmatmul.mubr.f32.vlgmr.msra.gmra.mxu1 %v2687_v41  ;;  %1155 = vmatmul.mubr.f32.vlgmr.msra.gmra.mxu0 %v2687_v41 }
 0x368   :  { %1162 = vmatpush1.msra.mxu1 %v867_v42  ;;  %1406 = vmatpush3.msra.mxu0 %v869_v43  ;;  %v762_v42 = vld [vmem:[%s3013_s8 + $0x20] sm:$0xff]  ;;  %v764_v43 = vld [vmem:[%s3013_s8 + $0x30] sm:$0xff] }
 0x369   :  { %1163 = vmatprep.subr.mxu1 %v861_v44  ;;  %1225 = vmatprep.mubr.f32.mxu1 %v757_v40  ;;  %v980_v44 = vld [vmem:[%s3013_s8 + $0x6f0] sm:$0xff] }
 0x36a   :  { %1407 = vmatprep.subr.mxu0 %v974_v47  ;;  %1296 = vmatprep.mubr.f32.mxu0 %v757_v40  ;;  %v876_v40 = vld [vmem:[%s3013_s8 + $0x3b0] sm:$0xff]  ;;  %v979_v47 = vld [vmem:[%s3013_s8 + $0x6e8] sm:$0xff] }
 0x36b   :  { %1164 = vmatpush1.msra.mxu1 %v860_v49  ;;  %1408 = vmatpush3.msra.mxu0 %v862_v50  ;;  %v973_v49 = vld [vmem:[%s3013_s8 + $0x6b8] sm:$0xff]  ;;  %v972_v50 = vld [vmem:[%s3013_s8 + $0x6b0] sm:$0xff] }
 0x36c   :  { %1165 = vmatprep.subr.mxu1 %v854_v51  ;;  %1409 = vmatprep.subr.mxu0 %v967_v52  ;;  %v966_v51 = vld [vmem:[%s3013_s8 + $0x680] sm:$0xff]  ;;  %v965_v52 = vld [vmem:[%s3013_s8 + $0x678] sm:$0xff] }
 0x36d   :  { %1166 = vmatpush1.msra.mxu1 %v853_v53  ;;  %1410 = vmatpush3.msra.mxu0 %v855_v54  ;;  %v959_v53 = vld [vmem:[%s3013_s8 + $0x648] sm:$0xff]  ;;  %v958_v54 = vld [vmem:[%s3013_s8 + $0x640] sm:$0xff] }
 0x36e   :  { %1167 = vmatprep.subr.mxu1 %v847_v55  ;;  %1411 = vmatprep.subr.mxu0 %v960_v56  ;;  %v952_v55 = vld [vmem:[%s3013_s8 + $0x610] sm:$0xff]  ;;  %v951_v56 = vld [vmem:[%s3013_s8 + $0x608] sm:$0xff] }
 0x36f   :  { %1168 = vmatpush1.msra.mxu1 %v846_v57  ;;  %1412 = vmatpush3.msra.mxu0 %v848_v58  ;;  %v945_v57 = vld [vmem:[%s3013_s8 + $0x5d8] sm:$0xff]  ;;  %v944_v58 = vld [vmem:[%s3013_s8 + $0x5d0] sm:$0xff] }
 0x370   :  { %1169 = vmatprep.subr.mxu1 %v840_v59  ;;  %1413 = vmatprep.subr.mxu0 %v953_v60  ;;  %v938_v59 = vld [vmem:[%s3013_s8 + $0x5a0] sm:$0xff]  ;;  %v937_v60 = vld [vmem:[%s3013_s8 + $0x598] sm:$0xff] }
 0x371   :  { %1170 = vmatpush1.msra.mxu1 %v839_v61  ;;  %1414 = vmatpush3.msra.mxu0 %v841_v62  ;;  %v931_v61 = vld [vmem:[%s3013_s8 + $0x568] sm:$0xff]  ;;  %v930_v62 = vld [vmem:[%s3013_s8 + $0x560] sm:$0xff] }
 0x372   :  { %1171 = vmatprep.subr.mxu1 %v833_v63  ;;  %1415 = vmatprep.subr.mxu0 %v946_v0  ;;  %v924_v63 = vld [vmem:[%s3013_s8 + $0x530] sm:$0xff]  ;;  %v923_v0 = vld [vmem:[%s3013_s8 + $0x528] sm:$0xff] }
 0x373   :  { %1172 = vmatpush1.msra.mxu1 %v832_v1  ;;  %1416 = vmatpush3.msra.mxu0 %v834_v2  ;;  %v917_v1 = vld [vmem:[%s3013_s8 + $0x4f8] sm:$0xff]  ;;  %v916_v2 = vld [vmem:[%s3013_s8 + $0x4f0] sm:$0xff] }
 0x374   :  { %1173 = vmatprep.subr.mxu1 %v826_v3  ;;  %1417 = vmatprep.subr.mxu0 %v939_v4  ;;  %v910_v3 = vld [vmem:[%s3013_s8 + $0x4c0] sm:$0xff]  ;;  %v909_v4 = vld [vmem:[%s3013_s8 + $0x4b8] sm:$0xff] }
 0x375   :  { %1174 = vmatpush1.msra.mxu1 %v825_v5  ;;  %1418 = vmatpush3.msra.mxu0 %v827_v6  ;;  %v903_v5 = vld [vmem:[%s3013_s8 + $0x488] sm:$0xff]  ;;  %v902_v6 = vld [vmem:[%s3013_s8 + $0x480] sm:$0xff] }
 0x376   :  { %1175 = vmatprep.subr.mxu1 %v819_v7  ;;  %1419 = vmatprep.subr.mxu0 %v932_v8  ;;  %v896_v7 = vld [vmem:[%s3013_s8 + $0x450] sm:$0xff]  ;;  %v895_v8 = vld [vmem:[%s3013_s8 + $0x448] sm:$0xff] }
 0x377   :  { %1176 = vmatpush1.msra.mxu1 %v818_v9  ;;  %1420 = vmatpush3.msra.mxu0 %v820_v10  ;;  %v889_v9 = vld [vmem:[%s3013_s8 + $0x418] sm:$0xff]  ;;  %v888_v10 = vld [vmem:[%s3013_s8 + $0x410] sm:$0xff] }
 0x378   :  { %1177 = vmatprep.subr.mxu1 %v812_v11  ;;  %1421 = vmatprep.subr.mxu0 %v925_v13  ;;  %v882_v11 = vld [vmem:[%s3013_s8 + $0x3e0] sm:$0xff]  ;;  %v881_v13 = vld [vmem:[%s3013_s8 + $0x3d8] sm:$0xff] }
 0x379   :  { %1178 = vmatpush1.msra.mxu1 %v811_v14  ;;  %1422 = vmatpush3.msra.mxu0 %v813_v15  ;;  %v875_v14 = vld [vmem:[%s3013_s8 + $0x3a8] sm:$0xff]  ;;  %v874_v15 = vld [vmem:[%s3013_s8 + $0x3a0] sm:$0xff] }
 0x37a   :  { %1179 = vmatprep.subr.mxu1 %v805_v16  ;;  %1423 = vmatprep.subr.mxu0 %v918_v17  ;;  %v994_v16 = vsub.s32 2, %v2240_v45  ;;  %v982_v17 = vld [vmem:[%s3016_s9] sm:$0xff] }
 0x37b   :  { %1180 = vmatpush1.msra.mxu1 %v804_v18  ;;  %1424 = vmatpush3.msra.mxu0 %v806_v19  ;;  %v998_v18 = vsub.s32 3, %v2240_v45  ;;  %v987_v19 = vrot.slane %v982_v17, %v2243_v46 }
 0x37c   :  { %1181 = vmatprep.subr.mxu1 %v798_v20  ;;  %1425 = vmatprep.subr.mxu0 %v911_v21  ;;  %v995_v20 = vrot.slane %v982_v17, %v994_v16  ;;  %v991_v21 = vrot.slane %v982_v17, %v2249_v48 }
 0x37d   :  { %1182 = vmatpush1.msra.mxu1 %v797_v22  ;;  %1426 = vmatpush3.msra.mxu0 %v799_v23  ;;  %v999_v22 = vrot.slane %v982_v17, %v998_v18 }
 0x37e   :  { %1183 = vmatprep.subr.mxu1 %v791_v24  ;;  %1427 = vmatprep.subr.mxu0 %v904_v25 }
 0x37f   :  { %1184 = vmatpush1.msra.mxu1 %v790_v26  ;;  %1428 = vmatpush3.msra.mxu0 %v792_v12 }
 0x380   :  { %1185 = vmatprep.subr.mxu1 %v784_v27  ;;  %1429 = vmatprep.subr.mxu0 %v897_v28 }
 0x381   :  { %1186 = vmatpush1.msra.mxu1 %v783_v29  ;;  %1430 = vmatpush3.msra.mxu0 %v785_v30 }
 0x382   :  { %1187 = vmatprep.subr.mxu1 %v777_v31  ;;  %1431 = vmatprep.subr.mxu0 %v890_v32 }
 0x383   :  { %1188 = vmatpush1.msra.mxu1 %v776_v33  ;;  %1432 = vmatpush3.msra.mxu0 %v778_v34 }
 0x384   :  { %1189 = vmatprep.subr.mxu1 %v770_v35  ;;  %1433 = vmatprep.subr.mxu0 %v883_v36 }
 0x385   :  { %1190 = vmatpush1.msra.mxu1 %v769_v37  ;;  %1434 = vmatpush3.msra.mxu0 %v771_v38 }
 0x386   :  { %1191 = vmatprep.subr.mxu1 %v763_v39  ;;  %1435 = vmatprep.subr.mxu0 %v876_v40  ;;  %v1010_v39 = vsub.s32 6, %v2240_v45 }
 0x387   :  { %1192 = vmatpush1.msra.mxu1 %v762_v42  ;;  %1436 = vmatpush3.msra.mxu0 %v764_v43 }
 0x388   :  { %1193 = vmatprep.subr.mxu1 %v980_v44  ;;  %1297 = vmatmul.mubr.f32.vlgmr.msra.gmra.mxu0 %v2687_v41  ;;  %v1011_v43 = vrot.slane %v982_v17, %v1010_v39 }
 0x389   :  { %1194 = vmatpush2.msra.mxu1 %v979_v47 }
 0x38a   :  { %1195 = vmatprep.subr.mxu1 %v973_v49 }
 0x38b   :  { %1196 = vmatpush2.msra.mxu1 %v972_v50 }
 0x38c   :  { %1197 = vmatprep.subr.mxu1 %v966_v51 }
 0x38d   :  { %1198 = vmatpush2.msra.mxu1 %v965_v52 }
 0x38e   :  { %1199 = vmatprep.subr.mxu1 %v959_v53 }
 0x38f   :  { %1200 = vmatpush2.msra.mxu1 %v958_v54 }
 0x390   :  { %1201 = vmatprep.subr.mxu1 %v952_v55 }
 0x391   :  { %1202 = vmatpush2.msra.mxu1 %v951_v56  ;;  %v1002_v56 = vsub.s32 4, %v2240_v45 }
 0x392   :  { %1203 = vmatprep.subr.mxu1 %v945_v57  ;;  %v1006_v57 = vsub.s32 5, %v2240_v45 }
 0x393   :  { %1204 = vmatpush2.msra.mxu1 %v944_v58  ;;  %v1003_v58 = vrot.slane %v982_v17, %v1002_v56 }
 0x394   :  { %1205 = vmatprep.subr.mxu1 %v938_v59  ;;  %v1007_v59 = vrot.slane %v982_v17, %v1006_v57 }
 0x395   :  { %1206 = vmatpush2.msra.mxu1 %v937_v60 }
 0x396   :  { %1207 = vmatprep.subr.mxu1 %v931_v61 }
 0x397   :  { %1208 = vmatpush2.msra.mxu1 %v930_v62 }
 0x398   :  { %1209 = vmatprep.subr.mxu1 %v924_v63 }
 0x399   :  { %1210 = vmatpush2.msra.mxu1 %v923_v0 }
 0x39a   :  { %1211 = vmatprep.subr.mxu1 %v917_v1 }
 0x39b   :  { %1212 = vmatpush2.msra.mxu1 %v916_v2 }
 0x39c   :  { %1213 = vmatprep.subr.mxu1 %v910_v3 }
 0x39d   :  { %1214 = vmatpush2.msra.mxu1 %v909_v4 }
 0x39e   :  { %1215 = vmatprep.subr.mxu1 %v903_v5 }
 0x39f   :  { %1216 = vmatpush2.msra.mxu1 %v902_v6 }
 0x3a0   :  { %1217 = vmatprep.subr.mxu1 %v896_v7 }
 0x3a1   :  { %1218 = vmatpush2.msra.mxu1 %v895_v8 }
 0x3a2   :  { %1219 = vmatprep.subr.mxu1 %v889_v9 }
 0x3a3   :  { %1220 = vmatpush2.msra.mxu1 %v888_v10 }
 0x3a4   :  { %1221 = vmatprep.subr.mxu1 %v882_v11 }
 0x3a5   :  { %1222 = vmatpush2.msra.mxu1 %v881_v13 }
 0x3a6   :  { %1223 = vmatprep.subr.mxu1 %v875_v14 }
 0x3a7   :  { %1224 = vmatpush2.msra.mxu1 %v874_v15 }
 0x3a8   :  { %1226 = vmatmul.mubr.f32.vlgmr.msra.gmra.mxu1 %v2687_v41 }
 0x427   :  { %v1085_v23 = vpop.f32.mrf.mxu1  ;;  %v1156_v24 = vpop.f32.mrf.mxu0 }
 0x428   :  { %v1086_v25 = vadd.f32 %v1085_v23, %v987_v19  ;;  %v1157_v26 = vadd.f32 %v1156_v24, %v995_v20 }
 0x429   :  { %v1087_v12 = vpop.f32.mrf.mxu1  ;;  %v1158_v41 = vpop.f32.mrf.mxu0 }
 0x42a   :  { %v1363_v27 = vmul.f32 -1.442695, %v1086_v25  ;;  %v1365_v28 = vmul.f32 -1.442695, %v1157_v26  ;;  %v1088_v29 = vadd.f32 %v1087_v12, %v991_v21  ;;  %v1159_v30 = vadd.f32 %v1158_v41, %v999_v22 }
 0x42c   :  { %1444 = vpow2.f32 %v1363_v27  ;;  %v1364_v31 = vmul.f32 -1.442695, %v1088_v29  ;;  %v1366_v32 = vmul.f32 -1.442695, %v1159_v30 }
 0x42d   :  { %1446 = vpow2.f32 %v1365_v28 }
 0x42e   :  { %1448 = vpow2.f32 %v1364_v31 }
 0x42f   :  { %1450 = vpow2.f32 %v1366_v32 }
 0x439   :  { %v1445_v46 = vpop.eup %1444 }
 0x43a   :  { %v1447_v33 = vpop.eup %1446  ;;  %v1323_v48 = vadd.f32 1.0, %v1445_v46 }
 0x43b   :  { %v1449_v34 = vpop.eup %1448  ;;  %v1325_v35 = vadd.f32 1.0, %v1447_v33 }
 0x43c   :  { %v1451_v36 = vpop.eup %1450  ;;  %1452 = vrcp.f32 %v1323_v48  ;;  %v1324_v37 = vadd.f32 1.0, %v1449_v34 }
 0x43d   :  { %1454 = vrcp.f32 %v1325_v35  ;;  %v1326_v38 = vadd.f32 1.0, %v1451_v36 }
 0x43e   :  { %1456 = vrcp.f32 %v1324_v37 }
 0x43f   :  { %1458 = vrcp.f32 %v1326_v38 }
 0x448   :  { %v1437_v40 = vpop.f32.mrf.mxu0 }
 0x449   :  { %v1453_v42 = vpop.eup %1452 }
 0x44a   :  { %v1455_v44 = vpop.eup %1454  ;;  %1344 = vst [vmem:[%s3017_s10] sm:$0xff] %v1453_v42  ;;  %v1438_v47 = vpop.f32.mrf.mxu0 }
 0x44b   :  { %v1457_v49 = vpop.eup %1456  ;;  %1346 = vst [vmem:[%s3017_s10 + $0x10] sm:$0xff] %v1455_v44  ;;  %v1439_v50 = vadd.f32 %v1438_v47, %v1437_v40 }
 0x44c   :  { %v1459_v51 = vpop.eup %1458  ;;  %1345 = vst [vmem:[%s3017_s10 + $0x8] sm:$0xff] %v1457_v49 }
 0x44d   :  { %1347 = vst [vmem:[%s3017_s10 + $0x18] sm:$0xff] %v1459_v51  ;;  %v1299_v52 = vadd.f32 %v1439_v50, %v1011_v43 }
 0x44f   :  { %v1369_v53 = vmul.f32 -1.442695, %v1299_v52 }
 0x451   :  { %1460 = vpow2.f32 %v1369_v53 }
 0x45e   :  { %v1461_v54 = vpop.eup %1460 }
 0x45f   :  { %v1329_v55 = vadd.f32 1.0, %v1461_v54 }
 0x461   :  { %1462 = vrcp.f32 %v1329_v55 }
 0x468   :  { %v1227_v60 = vpop.f32.mrf.mxu1 }
 0x469   :  { %v1228_v61 = vadd.f32 %v1227_v60, %v1003_v58 }
 0x46a   :  { %v1229_v62 = vpop.f32.mrf.mxu1 }
 0x46b   :  { %v1367_v63 = vmul.f32 -1.442695, %v1228_v61  ;;  %v1230_v0 = vadd.f32 %v1229_v62, %v1007_v59 }
 0x46d   :  { %1464 = vpow2.f32 %v1367_v63  ;;  %v1368_v1 = vmul.f32 -1.442695, %v1230_v0 }
 0x46e   :  { %v1463_v2 = vpop.eup %1462 }
 0x46f   :  { %1350 = vst [vmem:[%s3017_s10 + $0x30] sm:$0xff] %v1463_v2  ;;  %1466 = vpow2.f32 %v1368_v1 }
 0x47a   :  { %v1465_v3 = vpop.eup %1464 }
 0x47b   :  { %v1327_v4 = vadd.f32 1.0, %v1465_v3 }
 0x47c   :  { %v1467_v5 = vpop.eup %1466 }
 0x47d   :  { %1468 = vrcp.f32 %v1327_v4  ;;  %v1328_v45 = vadd.f32 1.0, %v1467_v5 }
 0x47f   :  { %1470 = vrcp.f32 %v1328_v45 }
 0x48a   :  { %v1469_v6 = vpop.eup %1468 }
 0x48b   :  { %1348 = vst [vmem:[%s3017_s10 + $0x20] sm:$0xff] %v1469_v6 }
 0x48c   :  { %v1471_v7 = vpop.eup %1470 }
 0x48d   :  { %1349 = vst [vmem:[%s3017_s10 + $0x28] sm:$0xff] %v1471_v7 }

</bundles_post_ra>
